<compile_context>
chip_gen: v5e
topology: v5e:2x2
jax: 0.10.0
libtpu: 0.0.40
codegen_flags: <defaults>
</compile_context>

<pallas_src>
import functools
import math

import jax
import jax.numpy as jnp
from jax.experimental import pallas as pl
from jax.experimental.pallas import tpu as pltpu


def transformer_classifier_kernel(
    x_ref, pe_ref,
    wq_ref, bq_ref, wk_ref, bk_ref, wv_ref, bv_ref, wo_ref, bo_ref,
    g1_ref, be1_ref,
    ffw1_ref, ffb1_ref, ffw2_ref, ffb2_ref,
    g2_ref, be2_ref,
    fc1w_ref, fc1b_ref, fc2w_ref, fc2b_ref,
    out_ref,
    *, num_heads,
):
    eps = 1e-5
    bf16 = jnp.bfloat16
    TB, S, E = x_ref.shape
    dh = E // num_heads

    # ---- positional encoding + flatten to (TB*S, E) for all dense math ----
    x = x_ref[...] + pe_ref[...][None, :, :]          # (TB, S, E) f32
    xf = x.reshape(TB * S, E)

    def mm(a_bf, w_ref):
        # bf16 operands on the MXU, f32 accumulation (weights already bf16).
        return jnp.dot(a_bf, w_ref[...], preferred_element_type=jnp.float32)

    # ---- multi-head self-attention (1/sqrt(dh) pre-folded into wq/bq) ----
    x_bf = xf.astype(bf16)                            # cast once, reuse 3x
    q = mm(x_bf, wq_ref) + bq_ref[...]                # (TB*S, E) f32
    k = mm(x_bf, wk_ref) + bk_ref[...]
    v = mm(x_bf, wv_ref) + bv_ref[...]

    q3 = q.astype(bf16).reshape(TB, S, E)
    k3 = k.astype(bf16).reshape(TB, S, E)
    v3 = v.astype(bf16).reshape(TB, S, E)

    # Per-head attention over all TB rows at once (3-D einsums, single batch
    # dim).  Head split/merge uses static lane slices + concat; at E=32 the
    # attention math/layout cost is negligible next to the dense matmuls.
    ctx_heads = []
    for h in range(num_heads):
        sl = slice(h * dh, (h + 1) * dh)
        qh, kh, vh = q3[:, :, sl], k3[:, :, sl], v3[:, :, sl]   # (TB, S, dh)
        s = jnp.einsum('bqd,bkd->bqk', qh, kh,
                       preferred_element_type=jnp.float32)      # (TB, S, S)
        s = s - jnp.max(s, axis=-1, keepdims=True)
        p = jnp.exp(s)
        p = p * pl.reciprocal(jnp.sum(p, axis=-1, keepdims=True), approx=True)
        ctx_heads.append(
            jnp.einsum('bqk,bkd->bqd', p.astype(bf16), vh,
                       preferred_element_type=jnp.float32))     # (TB, S, dh)
    ctx = jnp.concatenate(ctx_heads, axis=-1).reshape(TB * S, E)
    attn = mm(ctx.astype(bf16), wo_ref) + bo_ref[...]           # (TB*S, E)

    def layer_norm(y, g, b):
        mu = jnp.mean(y, axis=-1, keepdims=True)
        var = jnp.mean(y * y, axis=-1, keepdims=True) - mu * mu  # one pass
        return (y - mu) * jax.lax.rsqrt(var + eps) * g + b

    # residual + LN1 (dropout = identity at inference)
    out1 = layer_norm(xf + attn, g1_ref[...], be1_ref[...])

    # feed-forward
    h1 = jnp.maximum(mm(out1.astype(bf16), ffw1_ref) + ffb1_ref[...], 0.0)
    ff = mm(h1.astype(bf16), ffw2_ref) + ffb2_ref[...]

    # residual + LN2
    out2 = layer_norm(out1 + ff, g2_ref[...], be2_ref[...])

    # transpose(1,2) + AdaptiveAvgPool1d(1) == mean over the sequence axis
    pooled = jnp.mean(out2.reshape(TB, S, E), axis=1)           # (TB, E)

    # classifier head + exact class softmax (C=2 -> divide cost is nil)
    z1 = jnp.maximum(mm(pooled.astype(bf16), fc1w_ref) + fc1b_ref[...], 0.0)
    logits = mm(z1.astype(bf16), fc2w_ref) + fc2b_ref[...]      # (TB, C)
    logits = logits - jnp.max(logits, axis=-1, keepdims=True)
    ex = jnp.exp(logits)
    probs = ex / jnp.sum(ex, axis=-1, keepdims=True)
    out_ref[...] = probs.reshape(TB, 1, -1)


def sinusoidal_pe(max_len, embed_dim):
    pos = jnp.arange(max_len, dtype=jnp.float32)[:, None]
    i = jnp.arange(0, embed_dim, 2, dtype=jnp.float32)
    div = jnp.exp(-jnp.log(10000.0) * i / embed_dim)
    pe = jnp.stack([jnp.sin(pos * div), jnp.cos(pos * div)], axis=-1)
    return pe.reshape(max_len, embed_dim).astype(jnp.float32)


def make_params(key, embed_dim, ff_dim):
    ks = jax.random.split(key, 16)
    w = lambda k, shape: (0.05 * jax.random.normal(k, shape)).astype(jnp.float32)
    E, F = embed_dim, ff_dim
    return dict(
        # attention in-proj / out-proj, stored (in, out)
        wq=w(ks[0], (E, E)), bq=w(ks[1], (1, E)),
        wk=w(ks[2], (E, E)), bk=w(ks[3], (1, E)),
        wv=w(ks[4], (E, E)), bv=w(ks[5], (1, E)),
        wo=w(ks[6], (E, E)), bo=w(ks[7], (1, E)),
        # layernorms
        g1=jnp.ones((1, E), jnp.float32), be1=jnp.zeros((1, E), jnp.float32),
        g2=jnp.ones((1, E), jnp.float32), be2=jnp.zeros((1, E), jnp.float32),
        # feed-forward
        ffw1=w(ks[8], (E, F)), ffb1=w(ks[9], (1, F)),
        ffw2=w(ks[10], (F, E)), ffb2=w(ks[11], (1, E)),
        # classifier head
        fc1w=w(ks[12], (E, 32)), fc1b=w(ks[13], (1, 32)),
        fc2w=w(ks[14], (32, 2)), fc2b=w(ks[15], (1, 2)),
    )


def reference_forward(x, pe, params, num_heads):
    """Pure-JAX f32 reference of the PyTorch module (eval mode)."""
    B, S, E = x.shape
    dh = E // num_heads
    x = x + pe[None, :, :]
    q = (x @ params["wq"] + params["bq"]) / math.sqrt(dh)
    k = x @ params["wk"] + params["bk"]
    v = x @ params["wv"] + params["bv"]
    q = q.reshape(B, S, num_heads, dh).transpose(0, 2, 1, 3)
    k = k.reshape(B, S, num_heads, dh).transpose(0, 2, 1, 3)
    v = v.reshape(B, S, num_heads, dh).transpose(0, 2, 1, 3)
    p = jax.nn.softmax(jnp.einsum('bhqd,bhkd->bhqk', q, k), axis=-1)
    ctx = jnp.einsum('bhqk,bhkd->bhqd', p, v).transpose(0, 2, 1, 3).reshape(B, S, E)
    attn = ctx @ params["wo"] + params["bo"]

    def ln(y, g, b):
        mu = y.mean(-1, keepdims=True)
        var = ((y - mu) ** 2).mean(-1, keepdims=True)
        return (y - mu) * jax.lax.rsqrt(var + 1e-5) * g + b

    out1 = ln(x + attn, params["g1"], params["be1"])
    ffo = jax.nn.relu(out1 @ params["ffw1"] + params["ffb1"]) @ params["ffw2"] + params["ffb2"]
    out2 = ln(out1 + ffo, params["g2"], params["be2"])
    pooled = out2.mean(axis=1)
    z1 = jax.nn.relu(pooled @ params["fc1w"] + params["fc1b"])
    return jax.nn.softmax(z1 @ params["fc2w"] + params["fc2b"], axis=-1)


def _pick_tb(B, S, target_rows=256):
    """Largest divisor of B with TB*S <= target_rows, preferring >= 2 grid steps."""
    divs = [d for d in range(1, B + 1) if B % d == 0]
    cands = [d for d in divs if d * S <= target_rows]
    if not cands:
        return 1
    multi_step = [d for d in cands if B // d >= 2]
    return max(multi_step) if multi_step else max(cands)


@functools.partial(jax.jit, static_argnames=("num_heads",))
def transformer_classifier(x, pe, params, num_heads):
    B, S, E = x.shape
    F = params["ffw1"].shape[1]
    C = params["fc2w"].shape[1]
    assert E % num_heads == 0
    dh = E // num_heads
    scale = 1.0 / math.sqrt(dh)
    bf16 = jnp.bfloat16

    TB = _pick_tb(B, S)          # batch rows per grid step (TB*S rows per matmul)
    n_steps = B // TB

    # fold attention scale into the Q projection (in f32), then cast matmul
    # weights to bf16; biases / LN params stay f32.
    args = (
        x, pe,
        (params["wq"] * scale).astype(bf16), params["bq"] * scale,
        params["wk"].astype(bf16), params["bk"],
        params["wv"].astype(bf16), params["bv"],
        params["wo"].astype(bf16), params["bo"],
        params["g1"], params["be1"],
        params["ffw1"].astype(bf16), params["ffb1"],
        params["ffw2"].astype(bf16), params["ffb2"],
        params["g2"], params["be2"],
        params["fc1w"].astype(bf16), params["fc1b"],
        params["fc2w"].astype(bf16), params["fc2b"],
    )

    def resident(shape):
        # weight / bias: full block, same block every grid step (stays in VMEM)
        # TODO(synk): at production sizes on v7x, add pipeline_mode=pl.Buffered(1)
        # here to single-buffer the constant-index weights (halves resident VMEM).
        return pl.BlockSpec(shape, lambda b: (0,) * len(shape))

    in_specs = [
        pl.BlockSpec((TB, S, E), lambda b: (b, 0, 0)),  # x: TB batch rows / step
        resident((S, E)),                               # positional encoding
        resident((E, E)), resident((1, E)),             # wq, bq
        resident((E, E)), resident((1, E)),             # wk, bk
        resident((E, E)), resident((1, E)),             # wv, bv
        resident((E, E)), resident((1, E)),             # wo, bo
        resident((1, E)), resident((1, E)),             # ln1 gamma/beta
        resident((E, F)), resident((1, F)),             # ff w1/b1
        resident((F, E)), resident((1, E)),             # ff w2/b2
        resident((1, E)), resident((1, E)),             # ln2 gamma/beta
        resident((E, 32)), resident((1, 32)),           # fc1
        resident((32, C)), resident((1, C)),            # fc2
    ]
    out_specs = pl.BlockSpec((TB, 1, C), lambda b: (b, 0, 0))

    flops = int(B * (8 * S * E * E + 4 * S * S * E + 4 * S * E * F
                     + 2 * E * 32 + 2 * 32 * C))
    transcendentals = int(B * (num_heads * S * S + C + 2 * S))
    bytes_accessed = int(sum(a.size * a.dtype.itemsize for a in args) + B * C * 4)

    out = pl.pallas_call(
        functools.partial(transformer_classifier_kernel, num_heads=num_heads),
        out_shape=jax.ShapeDtypeStruct((B, 1, C), jnp.float32),
        grid_spec=pltpu.PrefetchScalarGridSpec(
            num_scalar_prefetch=0,
            grid=(n_steps,),
            in_specs=in_specs,
            out_specs=out_specs,
        ),
        compiler_params=pltpu.CompilerParams(
            dimension_semantics=("parallel",),
            vmem_limit_bytes=32 * 1024 * 1024,
        ),
        cost_estimate=pl.CostEstimate(
            flops=flops, transcendentals=transcendentals,
            bytes_accessed=bytes_accessed),
    )(*args)
    return out[:, 0, :]


if __name__ == "__main__":
    # small, module-consistent shapes (batch 4 so TB batching leaves >=2 grid steps)
    B, S, E, F, H, MAX_LEN = 4, 8, 32, 64, 4, 16

    key = jax.random.PRNGKey(0)
    kx, kp = jax.random.split(key)
    x = jax.random.normal(kx, (B, S, E), dtype=jnp.float32)
    params = make_params(kp, E, F)
    pe = sinusoidal_pe(MAX_LEN, E)[:S]        # slice PE to the sequence length

    # TODO(synk): dropout layers are omitted (inference / eval-mode semantics).
    probs = transformer_classifier(x, pe, params, num_heads=H)
    jax.block_until_ready(probs)

    assert probs.shape == (B, 2)
    assert bool(jnp.all(jnp.isfinite(probs)))
    # exact-divide class softmax: rows sum to 1
    assert float(jnp.max(jnp.abs(jnp.sum(probs, axis=-1) - 1.0))) < 1e-5

    # pure-JAX f32 reference; relaxed tolerance since kernel matmuls use bf16 operands
    ref = reference_forward(x, pe, params, num_heads=H)
    max_err = float(jnp.max(jnp.abs(probs - ref)))
    assert max_err < 5e-2, f"mismatch vs f32 reference: {max_err}"

    print("KERNEL_OK")
</pallas_src>

<mosaic_0001>
module attributes {stable_mosaic.version = 11 : i64} {
  func.func @transformer_classifier_kernel(%arg0: i32, %arg1: memref<2x8x32xf32, #tpu.memory_space<vmem>>, %arg2: memref<8x32xf32, #tpu.memory_space<vmem>>, %arg3: memref<32x32xbf16, #tpu.memory_space<vmem>>, %arg4: memref<1x32xf32, #tpu.memory_space<vmem>>, %arg5: memref<32x32xbf16, #tpu.memory_space<vmem>>, %arg6: memref<1x32xf32, #tpu.memory_space<vmem>>, %arg7: memref<32x32xbf16, #tpu.memory_space<vmem>>, %arg8: memref<1x32xf32, #tpu.memory_space<vmem>>, %arg9: memref<32x32xbf16, #tpu.memory_space<vmem>>, %arg10: memref<1x32xf32, #tpu.memory_space<vmem>>, %arg11: memref<1x32xf32, #tpu.memory_space<vmem>>, %arg12: memref<1x32xf32, #tpu.memory_space<vmem>>, %arg13: memref<32x64xbf16, #tpu.memory_space<vmem>>, %arg14: memref<1x64xf32, #tpu.memory_space<vmem>>, %arg15: memref<64x32xbf16, #tpu.memory_space<vmem>>, %arg16: memref<1x32xf32, #tpu.memory_space<vmem>>, %arg17: memref<1x32xf32, #tpu.memory_space<vmem>>, %arg18: memref<1x32xf32, #tpu.memory_space<vmem>>, %arg19: memref<32x32xbf16, #tpu.memory_space<vmem>>, %arg20: memref<1x32xf32, #tpu.memory_space<vmem>>, %arg21: memref<32x2xbf16, #tpu.memory_space<vmem>>, %arg22: memref<1x2xf32, #tpu.memory_space<vmem>>, %arg23: memref<2x1x2xf32, #tpu.memory_space<vmem>>) attributes {dimension_semantics = [#tpu.dimension_semantics<parallel>], iteration_bounds = array<i64: 2>, scalar_prefetch = 0 : i64, scratch_operands = 0 : i64, tpu.core_type = #tpu.core_type<tc>, window_params = [{transform_indices = @transform_0, window_bounds = array<i64: 2, 8, 32>}, {pipeline_mode = #tpu.pipeline_mode<synchronous>, transform_indices = @transform_1, window_bounds = array<i64: 8, 32>}, {pipeline_mode = #tpu.pipeline_mode<synchronous>, transform_indices = @transform_2, window_bounds = array<i64: 32, 32>}, {pipeline_mode = #tpu.pipeline_mode<synchronous>, transform_indices = @transform_3, window_bounds = array<i64: 1, 32>}, {pipeline_mode = #tpu.pipeline_mode<synchronous>, transform_indices = @transform_4, window_bounds = array<i64: 32, 32>}, {pipeline_mode = #tpu.pipeline_mode<synchronous>, transform_indices = @transform_5, window_bounds = array<i64: 1, 32>}, {pipeline_mode = #tpu.pipeline_mode<synchronous>, transform_indices = @transform_6, window_bounds = array<i64: 32, 32>}, {pipeline_mode = #tpu.pipeline_mode<synchronous>, transform_indices = @transform_7, window_bounds = array<i64: 1, 32>}, {pipeline_mode = #tpu.pipeline_mode<synchronous>, transform_indices = @transform_8, window_bounds = array<i64: 32, 32>}, {pipeline_mode = #tpu.pipeline_mode<synchronous>, transform_indices = @transform_9, window_bounds = array<i64: 1, 32>}, {pipeline_mode = #tpu.pipeline_mode<synchronous>, transform_indices = @transform_10, window_bounds = array<i64: 1, 32>}, {pipeline_mode = #tpu.pipeline_mode<synchronous>, transform_indices = @transform_11, window_bounds = array<i64: 1, 32>}, {pipeline_mode = #tpu.pipeline_mode<synchronous>, transform_indices = @transform_12, window_bounds = array<i64: 32, 64>}, {pipeline_mode = #tpu.pipeline_mode<synchronous>, transform_indices = @transform_13, window_bounds = array<i64: 1, 64>}, {pipeline_mode = #tpu.pipeline_mode<synchronous>, transform_indices = @transform_14, window_bounds = array<i64: 64, 32>}, {pipeline_mode = #tpu.pipeline_mode<synchronous>, transform_indices = @transform_15, window_bounds = array<i64: 1, 32>}, {pipeline_mode = #tpu.pipeline_mode<synchronous>, transform_indices = @transform_16, window_bounds = array<i64: 1, 32>}, {pipeline_mode = #tpu.pipeline_mode<synchronous>, transform_indices = @transform_17, window_bounds = array<i64: 1, 32>}, {pipeline_mode = #tpu.pipeline_mode<synchronous>, transform_indices = @transform_18, window_bounds = array<i64: 32, 32>}, {pipeline_mode = #tpu.pipeline_mode<synchronous>, transform_indices = @transform_19, window_bounds = array<i64: 1, 32>}, {pipeline_mode = #tpu.pipeline_mode<synchronous>, transform_indices = @transform_20, window_bounds = array<i64: 32, 2>}, {pipeline_mode = #tpu.pipeline_mode<synchronous>, transform_indices = @transform_21, window_bounds = array<i64: 1, 2>}, {transform_indices = @transform_22, window_bounds = array<i64: 2, 1, 2>}]} {
    %c0 = arith.constant 0 : index
    %c0_0 = arith.constant 0 : index
    %c0_1 = arith.constant 0 : index
    %0 = vector.load %arg1[%c0, %c0_0, %c0_1] : memref<2x8x32xf32, #tpu.memory_space<vmem>>, vector<2x8x32xf32>
    %c0_2 = arith.constant 0 : index
    %c0_3 = arith.constant 0 : index
    %1 = vector.load %arg2[%c0_2, %c0_3] : memref<8x32xf32, #tpu.memory_space<vmem>>, vector<8x32xf32>
    %2 = vector.shape_cast %1 : vector<8x32xf32> to vector<1x8x32xf32>
    %3 = vector.broadcast %2 : vector<1x8x32xf32> to vector<2x8x32xf32>
    %4 = arith.addf %0, %3 : vector<2x8x32xf32>
    %5 = vector.shape_cast %4 : vector<2x8x32xf32> to vector<16x32xf32>
    %6 = arith.truncf %5 : vector<16x32xf32> to vector<16x32xbf16>
    %c0_4 = arith.constant 0 : index
    %c0_5 = arith.constant 0 : index
    %7 = vector.load %arg3[%c0_4, %c0_5] : memref<32x32xbf16, #tpu.memory_space<vmem>>, vector<32x32xbf16>
    %cst = arith.constant dense<0.000000e+00> : vector<16x32xf32>
    %8 = tpu.matmul %6, %7, %cst {dimension_numbers = #tpu.dot_dimension_numbers<[1], [0], [0], [1], [0, 0, 1, 1], [], []>} : vector<16x32xbf16>, vector<32x32xbf16>, vector<16x32xf32> -> vector<16x32xf32>
    %c0_6 = arith.constant 0 : index
    %c0_7 = arith.constant 0 : index
    %9 = vector.load %arg4[%c0_6, %c0_7] : memref<1x32xf32, #tpu.memory_space<vmem>>, vector<1x32xf32>
    %10 = vector.broadcast %9 : vector<1x32xf32> to vector<16x32xf32>
    %11 = arith.addf %8, %10 : vector<16x32xf32>
    %c0_8 = arith.constant 0 : index
    %c0_9 = arith.constant 0 : index
    %12 = vector.load %arg5[%c0_8, %c0_9] : memref<32x32xbf16, #tpu.memory_space<vmem>>, vector<32x32xbf16>
    %cst_10 = arith.constant dense<0.000000e+00> : vector<16x32xf32>
    %13 = tpu.matmul %6, %12, %cst_10 {dimension_numbers = #tpu.dot_dimension_numbers<[1], [0], [0], [1], [0, 0, 1, 1], [], []>} : vector<16x32xbf16>, vector<32x32xbf16>, vector<16x32xf32> -> vector<16x32xf32>
    %c0_11 = arith.constant 0 : index
    %c0_12 = arith.constant 0 : index
    %14 = vector.load %arg6[%c0_11, %c0_12] : memref<1x32xf32, #tpu.memory_space<vmem>>, vector<1x32xf32>
    %15 = vector.broadcast %14 : vector<1x32xf32> to vector<16x32xf32>
    %16 = arith.addf %13, %15 : vector<16x32xf32>
    %c0_13 = arith.constant 0 : index
    %c0_14 = arith.constant 0 : index
    %17 = vector.load %arg7[%c0_13, %c0_14] : memref<32x32xbf16, #tpu.memory_space<vmem>>, vector<32x32xbf16>
    %cst_15 = arith.constant dense<0.000000e+00> : vector<16x32xf32>
    %18 = tpu.matmul %6, %17, %cst_15 {dimension_numbers = #tpu.dot_dimension_numbers<[1], [0], [0], [1], [0, 0, 1, 1], [], []>} : vector<16x32xbf16>, vector<32x32xbf16>, vector<16x32xf32> -> vector<16x32xf32>
    %c0_16 = arith.constant 0 : index
    %c0_17 = arith.constant 0 : index
    %19 = vector.load %arg8[%c0_16, %c0_17] : memref<1x32xf32, #tpu.memory_space<vmem>>, vector<1x32xf32>
    %20 = vector.broadcast %19 : vector<1x32xf32> to vector<16x32xf32>
    %21 = arith.addf %18, %20 : vector<16x32xf32>
    %22 = arith.truncf %11 : vector<16x32xf32> to vector<16x32xbf16>
    %23 = vector.shape_cast %22 : vector<16x32xbf16> to vector<2x8x32xbf16>
    %24 = arith.truncf %16 : vector<16x32xf32> to vector<16x32xbf16>
    %25 = vector.shape_cast %24 : vector<16x32xbf16> to vector<2x8x32xbf16>
    %26 = arith.truncf %21 : vector<16x32xf32> to vector<16x32xbf16>
    %27 = vector.shape_cast %26 : vector<16x32xbf16> to vector<2x8x32xbf16>
    %28 = vector.extract_strided_slice %23 {offsets = [0, 0, 0], sizes = [2, 8, 8], strides = [1, 1, 1]} : vector<2x8x32xbf16> to vector<2x8x8xbf16>
    %29 = vector.extract_strided_slice %25 {offsets = [0, 0, 0], sizes = [2, 8, 8], strides = [1, 1, 1]} : vector<2x8x32xbf16> to vector<2x8x8xbf16>
    %30 = vector.extract_strided_slice %27 {offsets = [0, 0, 0], sizes = [2, 8, 8], strides = [1, 1, 1]} : vector<2x8x32xbf16> to vector<2x8x8xbf16>
    "tpu.trace_start"() <{level = 10 : i32, message = "bqd,bkd->bqk"}> : () -> ()
    %cst_18 = arith.constant dense<0.000000e+00> : vector<2x8x8xf32>
    %31 = tpu.matmul %28, %29, %cst_18 {dimension_numbers = #tpu.dot_dimension_numbers<[2], [2], [1], [1], [0, 0, 0, 1, 1, 1], [0], [0]>} : vector<2x8x8xbf16>, vector<2x8x8xbf16>, vector<2x8x8xf32> -> vector<2x8x8xf32>
    "tpu.trace_stop"() : () -> ()
    %cst_19 = arith.constant dense<0xFF800000> : vector<2x8xf32>
    %32 = vector.multi_reduction <maximumf>, %31, %cst_19 [2] : vector<2x8x8xf32> to vector<2x8xf32>
    %33 = vector.shape_cast %32 : vector<2x8xf32> to vector<2x8x1xf32>
    %34 = vector.broadcast %33 : vector<2x8x1xf32> to vector<2x8x8xf32>
    %35 = arith.subf %31, %34 : vector<2x8x8xf32>
    %36 = math.exp %35 : vector<2x8x8xf32>
    %cst_20 = arith.constant dense<0.000000e+00> : vector<2x8xf32>
    %37 = vector.multi_reduction <add>, %36, %cst_20 [2] : vector<2x8x8xf32> to vector<2x8xf32>
    %38 = vector.shape_cast %37 : vector<2x8xf32> to vector<2x8x1xf32>
    %39 = tpu.reciprocal %38 {approx = true} : vector<2x8x1xf32> -> vector<2x8x1xf32>
    %40 = vector.broadcast %39 : vector<2x8x1xf32> to vector<2x8x8xf32>
    %41 = arith.mulf %36, %40 : vector<2x8x8xf32>
    %42 = arith.truncf %41 : vector<2x8x8xf32> to vector<2x8x8xbf16>
    "tpu.trace_start"() <{level = 10 : i32, message = "bqk,bkd->bqd"}> : () -> ()
    %cst_21 = arith.constant dense<0.000000e+00> : vector<2x8x8xf32>
    %43 = tpu.matmul %42, %30, %cst_21 {dimension_numbers = #tpu.dot_dimension_numbers<[2], [1], [1], [2], [0, 0, 0, 1, 1, 2], [0], [0]>} : vector<2x8x8xbf16>, vector<2x8x8xbf16>, vector<2x8x8xf32> -> vector<2x8x8xf32>
    "tpu.trace_stop"() : () -> ()
    %44 = vector.extract_strided_slice %23 {offsets = [0, 0, 8], sizes = [2, 8, 8], strides = [1, 1, 1]} : vector<2x8x32xbf16> to vector<2x8x8xbf16>
    %45 = vector.extract_strided_slice %25 {offsets = [0, 0, 8], sizes = [2, 8, 8], strides = [1, 1, 1]} : vector<2x8x32xbf16> to vector<2x8x8xbf16>
    %46 = vector.extract_strided_slice %27 {offsets = [0, 0, 8], sizes = [2, 8, 8], strides = [1, 1, 1]} : vector<2x8x32xbf16> to vector<2x8x8xbf16>
    "tpu.trace_start"() <{level = 10 : i32, message = "bqd,bkd->bqk"}> : () -> ()
    %cst_22 = arith.constant dense<0.000000e+00> : vector<2x8x8xf32>
    %47 = tpu.matmul %44, %45, %cst_22 {dimension_numbers = #tpu.dot_dimension_numbers<[2], [2], [1], [1], [0, 0, 0, 1, 1, 1], [0], [0]>} : vector<2x8x8xbf16>, vector<2x8x8xbf16>, vector<2x8x8xf32> -> vector<2x8x8xf32>
    "tpu.trace_stop"() : () -> ()
    %cst_23 = arith.constant dense<0xFF800000> : vector<2x8xf32>
    %48 = vector.multi_reduction <maximumf>, %47, %cst_23 [2] : vector<2x8x8xf32> to vector<2x8xf32>
    %49 = vector.shape_cast %48 : vector<2x8xf32> to vector<2x8x1xf32>
    %50 = vector.broadcast %49 : vector<2x8x1xf32> to vector<2x8x8xf32>
    %51 = arith.subf %47, %50 : vector<2x8x8xf32>
    %52 = math.exp %51 : vector<2x8x8xf32>
    %cst_24 = arith.constant dense<0.000000e+00> : vector<2x8xf32>
    %53 = vector.multi_reduction <add>, %52, %cst_24 [2] : vector<2x8x8xf32> to vector<2x8xf32>
    %54 = vector.shape_cast %53 : vector<2x8xf32> to vector<2x8x1xf32>
    %55 = tpu.reciprocal %54 {approx = true} : vector<2x8x1xf32> -> vector<2x8x1xf32>
    %56 = vector.broadcast %55 : vector<2x8x1xf32> to vector<2x8x8xf32>
    %57 = arith.mulf %52, %56 : vector<2x8x8xf32>
    %58 = arith.truncf %57 : vector<2x8x8xf32> to vector<2x8x8xbf16>
    "tpu.trace_start"() <{level = 10 : i32, message = "bqk,bkd->bqd"}> : () -> ()
    %cst_25 = arith.constant dense<0.000000e+00> : vector<2x8x8xf32>
    %59 = tpu.matmul %58, %46, %cst_25 {dimension_numbers = #tpu.dot_dimension_numbers<[2], [1], [1], [2], [0, 0, 0, 1, 1, 2], [0], [0]>} : vector<2x8x8xbf16>, vector<2x8x8xbf16>, vector<2x8x8xf32> -> vector<2x8x8xf32>
    "tpu.trace_stop"() : () -> ()
    %60 = vector.extract_strided_slice %23 {offsets = [0, 0, 16], sizes = [2, 8, 8], strides = [1, 1, 1]} : vector<2x8x32xbf16> to vector<2x8x8xbf16>
    %61 = vector.extract_strided_slice %25 {offsets = [0, 0, 16], sizes = [2, 8, 8], strides = [1, 1, 1]} : vector<2x8x32xbf16> to vector<2x8x8xbf16>
    %62 = vector.extract_strided_slice %27 {offsets = [0, 0, 16], sizes = [2, 8, 8], strides = [1, 1, 1]} : vector<2x8x32xbf16> to vector<2x8x8xbf16>
    "tpu.trace_start"() <{level = 10 : i32, message = "bqd,bkd->bqk"}> : () -> ()
    %cst_26 = arith.constant dense<0.000000e+00> : vector<2x8x8xf32>
    %63 = tpu.matmul %60, %61, %cst_26 {dimension_numbers = #tpu.dot_dimension_numbers<[2], [2], [1], [1], [0, 0, 0, 1, 1, 1], [0], [0]>} : vector<2x8x8xbf16>, vector<2x8x8xbf16>, vector<2x8x8xf32> -> vector<2x8x8xf32>
    "tpu.trace_stop"() : () -> ()
    %cst_27 = arith.constant dense<0xFF800000> : vector<2x8xf32>
    %64 = vector.multi_reduction <maximumf>, %63, %cst_27 [2] : vector<2x8x8xf32> to vector<2x8xf32>
    %65 = vector.shape_cast %64 : vector<2x8xf32> to vector<2x8x1xf32>
    %66 = vector.broadcast %65 : vector<2x8x1xf32> to vector<2x8x8xf32>
    %67 = arith.subf %63, %66 : vector<2x8x8xf32>
    %68 = math.exp %67 : vector<2x8x8xf32>
    %cst_28 = arith.constant dense<0.000000e+00> : vector<2x8xf32>
    %69 = vector.multi_reduction <add>, %68, %cst_28 [2] : vector<2x8x8xf32> to vector<2x8xf32>
    %70 = vector.shape_cast %69 : vector<2x8xf32> to vector<2x8x1xf32>
    %71 = tpu.reciprocal %70 {approx = true} : vector<2x8x1xf32> -> vector<2x8x1xf32>
    %72 = vector.broadcast %71 : vector<2x8x1xf32> to vector<2x8x8xf32>
    %73 = arith.mulf %68, %72 : vector<2x8x8xf32>
    %74 = arith.truncf %73 : vector<2x8x8xf32> to vector<2x8x8xbf16>
    "tpu.trace_start"() <{level = 10 : i32, message = "bqk,bkd->bqd"}> : () -> ()
    %cst_29 = arith.constant dense<0.000000e+00> : vector<2x8x8xf32>
    %75 = tpu.matmul %74, %62, %cst_29 {dimension_numbers = #tpu.dot_dimension_numbers<[2], [1], [1], [2], [0, 0, 0, 1, 1, 2], [0], [0]>} : vector<2x8x8xbf16>, vector<2x8x8xbf16>, vector<2x8x8xf32> -> vector<2x8x8xf32>
    "tpu.trace_stop"() : () -> ()
    %76 = vector.extract_strided_slice %23 {offsets = [0, 0, 24], sizes = [2, 8, 8], strides = [1, 1, 1]} : vector<2x8x32xbf16> to vector<2x8x8xbf16>
    %77 = vector.extract_strided_slice %25 {offsets = [0, 0, 24], sizes = [2, 8, 8], strides = [1, 1, 1]} : vector<2x8x32xbf16> to vector<2x8x8xbf16>
    %78 = vector.extract_strided_slice %27 {offsets = [0, 0, 24], sizes = [2, 8, 8], strides = [1, 1, 1]} : vector<2x8x32xbf16> to vector<2x8x8xbf16>
    "tpu.trace_start"() <{level = 10 : i32, message = "bqd,bkd->bqk"}> : () -> ()
    %cst_30 = arith.constant dense<0.000000e+00> : vector<2x8x8xf32>
    %79 = tpu.matmul %76, %77, %cst_30 {dimension_numbers = #tpu.dot_dimension_numbers<[2], [2], [1], [1], [0, 0, 0, 1, 1, 1], [0], [0]>} : vector<2x8x8xbf16>, vector<2x8x8xbf16>, vector<2x8x8xf32> -> vector<2x8x8xf32>
    "tpu.trace_stop"() : () -> ()
    %cst_31 = arith.constant dense<0xFF800000> : vector<2x8xf32>
    %80 = vector.multi_reduction <maximumf>, %79, %cst_31 [2] : vector<2x8x8xf32> to vector<2x8xf32>
    %81 = vector.shape_cast %80 : vector<2x8xf32> to vector<2x8x1xf32>
    %82 = vector.broadcast %81 : vector<2x8x1xf32> to vector<2x8x8xf32>
    %83 = arith.subf %79, %82 : vector<2x8x8xf32>
    %84 = math.exp %83 : vector<2x8x8xf32>
    %cst_32 = arith.constant dense<0.000000e+00> : vector<2x8xf32>
    %85 = vector.multi_reduction <add>, %84, %cst_32 [2] : vector<2x8x8xf32> to vector<2x8xf32>
    %86 = vector.shape_cast %85 : vector<2x8xf32> to vector<2x8x1xf32>
    %87 = tpu.reciprocal %86 {approx = true} : vector<2x8x1xf32> -> vector<2x8x1xf32>
    %88 = vector.broadcast %87 : vector<2x8x1xf32> to vector<2x8x8xf32>
    %89 = arith.mulf %84, %88 : vector<2x8x8xf32>
    %90 = arith.truncf %89 : vector<2x8x8xf32> to vector<2x8x8xbf16>
    "tpu.trace_start"() <{level = 10 : i32, message = "bqk,bkd->bqd"}> : () -> ()
    %cst_33 = arith.constant dense<0.000000e+00> : vector<2x8x8xf32>
    %91 = tpu.matmul %90, %78, %cst_33 {dimension_numbers = #tpu.dot_dimension_numbers<[2], [1], [1], [2], [0, 0, 0, 1, 1, 2], [0], [0]>} : vector<2x8x8xbf16>, vector<2x8x8xbf16>, vector<2x8x8xf32> -> vector<2x8x8xf32>
    "tpu.trace_stop"() : () -> ()
    %92 = tpu.concatenate %43, %59, %75, %91 in 2 : vector<2x8x8xf32>, vector<2x8x8xf32>, vector<2x8x8xf32>, vector<2x8x8xf32> -> vector<2x8x32xf32>
    %93 = vector.shape_cast %92 : vector<2x8x32xf32> to vector<16x32xf32>
    %94 = arith.truncf %93 : vector<16x32xf32> to vector<16x32xbf16>
    %c0_34 = arith.constant 0 : index
    %c0_35 = arith.constant 0 : index
    %95 = vector.load %arg9[%c0_34, %c0_35] : memref<32x32xbf16, #tpu.memory_space<vmem>>, vector<32x32xbf16>
    %cst_36 = arith.constant dense<0.000000e+00> : vector<16x32xf32>
    %96 = tpu.matmul %94, %95, %cst_36 {dimension_numbers = #tpu.dot_dimension_numbers<[1], [0], [0], [1], [0, 0, 1, 1], [], []>} : vector<16x32xbf16>, vector<32x32xbf16>, vector<16x32xf32> -> vector<16x32xf32>
    %c0_37 = arith.constant 0 : index
    %c0_38 = arith.constant 0 : index
    %97 = vector.load %arg10[%c0_37, %c0_38] : memref<1x32xf32, #tpu.memory_space<vmem>>, vector<1x32xf32>
    %98 = vector.broadcast %97 : vector<1x32xf32> to vector<16x32xf32>
    %99 = arith.addf %96, %98 : vector<16x32xf32>
    %100 = arith.addf %5, %99 : vector<16x32xf32>
    %c0_39 = arith.constant 0 : index
    %c0_40 = arith.constant 0 : index
    %101 = vector.load %arg11[%c0_39, %c0_40] : memref<1x32xf32, #tpu.memory_space<vmem>>, vector<1x32xf32>
    %c0_41 = arith.constant 0 : index
    %c0_42 = arith.constant 0 : index
    %102 = vector.load %arg12[%c0_41, %c0_42] : memref<1x32xf32, #tpu.memory_space<vmem>>, vector<1x32xf32>
    %cst_43 = arith.constant dense<0.000000e+00> : vector<16xf32>
    %103 = vector.multi_reduction <add>, %100, %cst_43 [1] : vector<16x32xf32> to vector<16xf32>
    %104 = vector.shape_cast %103 : vector<16xf32> to vector<16x1xf32>
    %cst_44 = arith.constant 3.200000e+01 : f32
    %105 = vector.broadcast %cst_44 : f32 to vector<16x1xf32>
    %106 = arith.divf %104, %105 : vector<16x1xf32>
    %107 = arith.mulf %100, %100 : vector<16x32xf32>
    %cst_45 = arith.constant dense<0.000000e+00> : vector<16xf32>
    %108 = vector.multi_reduction <add>, %107, %cst_45 [1] : vector<16x32xf32> to vector<16xf32>
    %109 = vector.shape_cast %108 : vector<16xf32> to vector<16x1xf32>
    %cst_46 = arith.constant 3.200000e+01 : f32
    %110 = vector.broadcast %cst_46 : f32 to vector<16x1xf32>
    %111 = arith.divf %109, %110 : vector<16x1xf32>
    %112 = arith.mulf %106, %106 : vector<16x1xf32>
    %113 = arith.subf %111, %112 : vector<16x1xf32>
    %114 = vector.broadcast %106 : vector<16x1xf32> to vector<16x32xf32>
    %115 = arith.subf %100, %114 : vector<16x32xf32>
    %cst_47 = arith.constant 9.99999974E-6 : f32
    %116 = vector.broadcast %cst_47 : f32 to vector<16x1xf32>
    %117 = arith.addf %113, %116 : vector<16x1xf32>
    %118 = math.rsqrt %117 : vector<16x1xf32>
    %119 = vector.broadcast %118 : vector<16x1xf32> to vector<16x32xf32>
    %120 = arith.mulf %115, %119 : vector<16x32xf32>
    %121 = vector.broadcast %101 : vector<1x32xf32> to vector<16x32xf32>
    %122 = arith.mulf %120, %121 : vector<16x32xf32>
    %123 = vector.broadcast %102 : vector<1x32xf32> to vector<16x32xf32>
    %124 = arith.addf %122, %123 : vector<16x32xf32>
    %125 = arith.truncf %124 : vector<16x32xf32> to vector<16x32xbf16>
    %c0_48 = arith.constant 0 : index
    %c0_49 = arith.constant 0 : index
    %126 = vector.load %arg13[%c0_48, %c0_49] : memref<32x64xbf16, #tpu.memory_space<vmem>>, vector<32x64xbf16>
    %cst_50 = arith.constant dense<0.000000e+00> : vector<16x64xf32>
    %127 = tpu.matmul %125, %126, %cst_50 {dimension_numbers = #tpu.dot_dimension_numbers<[1], [0], [0], [1], [0, 0, 1, 1], [], []>} : vector<16x32xbf16>, vector<32x64xbf16>, vector<16x64xf32> -> vector<16x64xf32>
    %c0_51 = arith.constant 0 : index
    %c0_52 = arith.constant 0 : index
    %128 = vector.load %arg14[%c0_51, %c0_52] : memref<1x64xf32, #tpu.memory_space<vmem>>, vector<1x64xf32>
    %129 = vector.broadcast %128 : vector<1x64xf32> to vector<16x64xf32>
    %130 = arith.addf %127, %129 : vector<16x64xf32>
    %cst_53 = arith.constant 0.000000e+00 : f32
    %131 = vector.broadcast %cst_53 : f32 to vector<16x64xf32>
    %132 = arith.maximumf %130, %131 : vector<16x64xf32>
    %133 = arith.truncf %132 : vector<16x64xf32> to vector<16x64xbf16>
    %c0_54 = arith.constant 0 : index
    %c0_55 = arith.constant 0 : index
    %134 = vector.load %arg15[%c0_54, %c0_55] : memref<64x32xbf16, #tpu.memory_space<vmem>>, vector<64x32xbf16>
    %cst_56 = arith.constant dense<0.000000e+00> : vector<16x32xf32>
    %135 = tpu.matmul %133, %134, %cst_56 {dimension_numbers = #tpu.dot_dimension_numbers<[1], [0], [0], [1], [0, 0, 1, 1], [], []>} : vector<16x64xbf16>, vector<64x32xbf16>, vector<16x32xf32> -> vector<16x32xf32>
    %c0_57 = arith.constant 0 : index
    %c0_58 = arith.constant 0 : index
    %136 = vector.load %arg16[%c0_57, %c0_58] : memref<1x32xf32, #tpu.memory_space<vmem>>, vector<1x32xf32>
    %137 = vector.broadcast %136 : vector<1x32xf32> to vector<16x32xf32>
    %138 = arith.addf %135, %137 : vector<16x32xf32>
    %139 = arith.addf %124, %138 : vector<16x32xf32>
    %c0_59 = arith.constant 0 : index
    %c0_60 = arith.constant 0 : index
    %140 = vector.load %arg17[%c0_59, %c0_60] : memref<1x32xf32, #tpu.memory_space<vmem>>, vector<1x32xf32>
    %c0_61 = arith.constant 0 : index
    %c0_62 = arith.constant 0 : index
    %141 = vector.load %arg18[%c0_61, %c0_62] : memref<1x32xf32, #tpu.memory_space<vmem>>, vector<1x32xf32>
    %cst_63 = arith.constant dense<0.000000e+00> : vector<16xf32>
    %142 = vector.multi_reduction <add>, %139, %cst_63 [1] : vector<16x32xf32> to vector<16xf32>
    %143 = vector.shape_cast %142 : vector<16xf32> to vector<16x1xf32>
    %cst_64 = arith.constant 3.200000e+01 : f32
    %144 = vector.broadcast %cst_64 : f32 to vector<16x1xf32>
    %145 = arith.divf %143, %144 : vector<16x1xf32>
    %146 = arith.mulf %139, %139 : vector<16x32xf32>
    %cst_65 = arith.constant dense<0.000000e+00> : vector<16xf32>
    %147 = vector.multi_reduction <add>, %146, %cst_65 [1] : vector<16x32xf32> to vector<16xf32>
    %148 = vector.shape_cast %147 : vector<16xf32> to vector<16x1xf32>
    %cst_66 = arith.constant 3.200000e+01 : f32
    %149 = vector.broadcast %cst_66 : f32 to vector<16x1xf32>
    %150 = arith.divf %148, %149 : vector<16x1xf32>
    %151 = arith.mulf %145, %145 : vector<16x1xf32>
    %152 = arith.subf %150, %151 : vector<16x1xf32>
    %153 = vector.broadcast %145 : vector<16x1xf32> to vector<16x32xf32>
    %154 = arith.subf %139, %153 : vector<16x32xf32>
    %cst_67 = arith.constant 9.99999974E-6 : f32
    %155 = vector.broadcast %cst_67 : f32 to vector<16x1xf32>
    %156 = arith.addf %152, %155 : vector<16x1xf32>
    %157 = math.rsqrt %156 : vector<16x1xf32>
    %158 = vector.broadcast %157 : vector<16x1xf32> to vector<16x32xf32>
    %159 = arith.mulf %154, %158 : vector<16x32xf32>
    %160 = vector.broadcast %140 : vector<1x32xf32> to vector<16x32xf32>
    %161 = arith.mulf %159, %160 : vector<16x32xf32>
    %162 = vector.broadcast %141 : vector<1x32xf32> to vector<16x32xf32>
    %163 = arith.addf %161, %162 : vector<16x32xf32>
    %164 = vector.shape_cast %163 : vector<16x32xf32> to vector<2x8x32xf32>
    %cst_68 = arith.constant dense<0.000000e+00> : vector<2x32xf32>
    %165 = vector.multi_reduction <add>, %164, %cst_68 [1] : vector<2x8x32xf32> to vector<2x32xf32>
    %cst_69 = arith.constant 8.000000e+00 : f32
    %166 = vector.broadcast %cst_69 : f32 to vector<2x32xf32>
    %167 = arith.divf %165, %166 : vector<2x32xf32>
    %168 = arith.truncf %167 : vector<2x32xf32> to vector<2x32xbf16>
    %c0_70 = arith.constant 0 : index
    %c0_71 = arith.constant 0 : index
    %169 = vector.load %arg19[%c0_70, %c0_71] : memref<32x32xbf16, #tpu.memory_space<vmem>>, vector<32x32xbf16>
    %cst_72 = arith.constant dense<0.000000e+00> : vector<2x32xf32>
    %170 = tpu.matmul %168, %169, %cst_72 {dimension_numbers = #tpu.dot_dimension_numbers<[1], [0], [0], [1], [0, 0, 1, 1], [], []>} : vector<2x32xbf16>, vector<32x32xbf16>, vector<2x32xf32> -> vector<2x32xf32>
    %c0_73 = arith.constant 0 : index
    %c0_74 = arith.constant 0 : index
    %171 = vector.load %arg20[%c0_73, %c0_74] : memref<1x32xf32, #tpu.memory_space<vmem>>, vector<1x32xf32>
    %172 = vector.broadcast %171 : vector<1x32xf32> to vector<2x32xf32>
    %173 = arith.addf %170, %172 : vector<2x32xf32>
    %cst_75 = arith.constant 0.000000e+00 : f32
    %174 = vector.broadcast %cst_75 : f32 to vector<2x32xf32>
    %175 = arith.maximumf %173, %174 : vector<2x32xf32>
    %176 = arith.truncf %175 : vector<2x32xf32> to vector<2x32xbf16>
    %c0_76 = arith.constant 0 : index
    %c0_77 = arith.constant 0 : index
    %177 = vector.load %arg21[%c0_76, %c0_77] : memref<32x2xbf16, #tpu.memory_space<vmem>>, vector<32x2xbf16>
    %cst_78 = arith.constant dense<0.000000e+00> : vector<2x2xf32>
    %178 = tpu.matmul %176, %177, %cst_78 {dimension_numbers = #tpu.dot_dimension_numbers<[1], [0], [0], [1], [0, 0, 1, 1], [], []>} : vector<2x32xbf16>, vector<32x2xbf16>, vector<2x2xf32> -> vector<2x2xf32>
    %c0_79 = arith.constant 0 : index
    %c0_80 = arith.constant 0 : index
    %179 = vector.load %arg22[%c0_79, %c0_80] : memref<1x2xf32, #tpu.memory_space<vmem>>, vector<1x2xf32>
    %180 = vector.broadcast %179 : vector<1x2xf32> to vector<2x2xf32>
    %181 = arith.addf %178, %180 : vector<2x2xf32>
    %cst_81 = arith.constant dense<0xFF800000> : vector<2xf32>
    %182 = vector.multi_reduction <maximumf>, %181, %cst_81 [1] : vector<2x2xf32> to vector<2xf32>
    %183 = vector.shape_cast %182 : vector<2xf32> to vector<2x1xf32>
    %184 = vector.broadcast %183 : vector<2x1xf32> to vector<2x2xf32>
    %185 = arith.subf %181, %184 : vector<2x2xf32>
    %186 = math.exp %185 : vector<2x2xf32>
    %cst_82 = arith.constant dense<0.000000e+00> : vector<2xf32>
    %187 = vector.multi_reduction <add>, %186, %cst_82 [1] : vector<2x2xf32> to vector<2xf32>
    %188 = vector.shape_cast %187 : vector<2xf32> to vector<2x1xf32>
    %189 = vector.broadcast %188 : vector<2x1xf32> to vector<2x2xf32>
    %190 = arith.divf %186, %189 : vector<2x2xf32>
    %191 = vector.shape_cast %190 : vector<2x2xf32> to vector<2x1x2xf32>
    %c0_83 = arith.constant 0 : index
    %c0_84 = arith.constant 0 : index
    %c0_85 = arith.constant 0 : index
    %192 = vector.load %arg23[%c0_83, %c0_84, %c0_85] : memref<2x1x2xf32, #tpu.memory_space<vmem>>, vector<2x1x2xf32>
    tpu.vector_store %arg23[%c0_83, %c0_84, %c0_85], %191 {strides = array<i32>} : memref<2x1x2xf32, #tpu.memory_space<vmem>>, vector<2x1x2xf32>,
    return
  }
  func.func @transform_0(%arg0: i32) -> (i32, i32, i32) {
    %c0_i32 = arith.constant 0 : i32
    %c0_i32_0 = arith.constant 0 : i32
    %c0_i32_1 = arith.constant 0 : i32
    return %arg0, %c0_i32, %c0_i32_0 : i32, i32, i32
  }
  func.func @transform_1(%arg0: i32) -> (i32, i32) {
    %c0_i32 = arith.constant 0 : i32
    %c0_i32_0 = arith.constant 0 : i32
    %c0_i32_1 = arith.constant 0 : i32
    return %c0_i32, %c0_i32_0 : i32, i32
  }
  func.func @transform_2(%arg0: i32) -> (i32, i32) {
    %c0_i32 = arith.constant 0 : i32
    %c0_i32_0 = arith.constant 0 : i32
    %c0_i32_1 = arith.constant 0 : i32
    return %c0_i32, %c0_i32_0 : i32, i32
  }
  func.func @transform_3(%arg0: i32) -> (i32, i32) {
    %c0_i32 = arith.constant 0 : i32
    %c0_i32_0 = arith.constant 0 : i32
    %c0_i32_1 = arith.constant 0 : i32
    return %c0_i32, %c0_i32_0 : i32, i32
  }
  func.func @transform_4(%arg0: i32) -> (i32, i32) {
    %c0_i32 = arith.constant 0 : i32
    %c0_i32_0 = arith.constant 0 : i32
    %c0_i32_1 = arith.constant 0 : i32
    return %c0_i32, %c0_i32_0 : i32, i32
  }
  func.func @transform_5(%arg0: i32) -> (i32, i32) {
    %c0_i32 = arith.constant 0 : i32
    %c0_i32_0 = arith.constant 0 : i32
    %c0_i32_1 = arith.constant 0 : i32
    return %c0_i32, %c0_i32_0 : i32, i32
  }
  func.func @transform_6(%arg0: i32) -> (i32, i32) {
    %c0_i32 = arith.constant 0 : i32
    %c0_i32_0 = arith.constant 0 : i32
    %c0_i32_1 = arith.constant 0 : i32
    return %c0_i32, %c0_i32_0 : i32, i32
  }
  func.func @transform_7(%arg0: i32) -> (i32, i32) {
    %c0_i32 = arith.constant 0 : i32
    %c0_i32_0 = arith.constant 0 : i32
    %c0_i32_1 = arith.constant 0 : i32
    return %c0_i32, %c0_i32_0 : i32, i32
  }
  func.func @transform_8(%arg0: i32) -> (i32, i32) {
    %c0_i32 = arith.constant 0 : i32
    %c0_i32_0 = arith.constant 0 : i32
    %c0_i32_1 = arith.constant 0 : i32
    return %c0_i32, %c0_i32_0 : i32, i32
  }
  func.func @transform_9(%arg0: i32) -> (i32, i32) {
    %c0_i32 = arith.constant 0 : i32
    %c0_i32_0 = arith.constant 0 : i32
    %c0_i32_1 = arith.constant 0 : i32
    return %c0_i32, %c0_i32_0 : i32, i32
  }
  func.func @transform_10(%arg0: i32) -> (i32, i32) {
    %c0_i32 = arith.constant 0 : i32
    %c0_i32_0 = arith.constant 0 : i32
    %c0_i32_1 = arith.constant 0 : i32
    return %c0_i32, %c0_i32_0 : i32, i32
  }
  func.func @transform_11(%arg0: i32) -> (i32, i32) {
    %c0_i32 = arith.constant 0 : i32
    %c0_i32_0 = arith.constant 0 : i32
    %c0_i32_1 = arith.constant 0 : i32
    return %c0_i32, %c0_i32_0 : i32, i32
  }
  func.func @transform_12(%arg0: i32) -> (i32, i32) {
    %c0_i32 = arith.constant 0 : i32
    %c0_i32_0 = arith.constant 0 : i32
    %c0_i32_1 = arith.constant 0 : i32
    return %c0_i32, %c0_i32_0 : i32, i32
  }
  func.func @transform_13(%arg0: i32) -> (i32, i32) {
    %c0_i32 = arith.constant 0 : i32
    %c0_i32_0 = arith.constant 0 : i32
    %c0_i32_1 = arith.constant 0 : i32
    return %c0_i32, %c0_i32_0 : i32, i32
  }
  func.func @transform_14(%arg0: i32) -> (i32, i32) {
    %c0_i32 = arith.constant 0 : i32
    %c0_i32_0 = arith.constant 0 : i32
    %c0_i32_1 = arith.constant 0 : i32
    return %c0_i32, %c0_i32_0 : i32, i32
  }
  func.func @transform_15(%arg0: i32) -> (i32, i32) {
    %c0_i32 = arith.constant 0 : i32
    %c0_i32_0 = arith.constant 0 : i32
    %c0_i32_1 = arith.constant 0 : i32
    return %c0_i32, %c0_i32_0 : i32, i32
  }
  func.func @transform_16(%arg0: i32) -> (i32, i32) {
    %c0_i32 = arith.constant 0 : i32
    %c0_i32_0 = arith.constant 0 : i32
    %c0_i32_1 = arith.constant 0 : i32
    return %c0_i32, %c0_i32_0 : i32, i32
  }
  func.func @transform_17(%arg0: i32) -> (i32, i32) {
    %c0_i32 = arith.constant 0 : i32
    %c0_i32_0 = arith.constant 0 : i32
    %c0_i32_1 = arith.constant 0 : i32
    return %c0_i32, %c0_i32_0 : i32, i32
  }
  func.func @transform_18(%arg0: i32) -> (i32, i32) {
    %c0_i32 = arith.constant 0 : i32
    %c0_i32_0 = arith.constant 0 : i32
    %c0_i32_1 = arith.constant 0 : i32
    return %c0_i32, %c0_i32_0 : i32, i32
  }
  func.func @transform_19(%arg0: i32) -> (i32, i32) {
    %c0_i32 = arith.constant 0 : i32
    %c0_i32_0 = arith.constant 0 : i32
    %c0_i32_1 = arith.constant 0 : i32
    return %c0_i32, %c0_i32_0 : i32, i32
  }
  func.func @transform_20(%arg0: i32) -> (i32, i32) {
    %c0_i32 = arith.constant 0 : i32
    %c0_i32_0 = arith.constant 0 : i32
    %c0_i32_1 = arith.constant 0 : i32
    return %c0_i32, %c0_i32_0 : i32, i32
  }
  func.func @transform_21(%arg0: i32) -> (i32, i32) {
    %c0_i32 = arith.constant 0 : i32
    %c0_i32_0 = arith.constant 0 : i32
    %c0_i32_1 = arith.constant 0 : i32
    return %c0_i32, %c0_i32_0 : i32, i32
  }
  func.func @transform_22(%arg0: i32) -> (i32, i32, i32) {
    %c0_i32 = arith.constant 0 : i32
    %c0_i32_0 = arith.constant 0 : i32
    %c0_i32_1 = arith.constant 0 : i32
    return %arg0, %c0_i32, %c0_i32_0 : i32, i32, i32
  }
}

</mosaic_0001>

<bundles_post_ra>
// kernel: transformer_classifier.1
= control target key start
LH: loop header
LB: loop body
LE: loop exit
PB: predicated region body
PF: predicated region fallthrough
CT: control target
= control target key end

     0   :  { %s2334_s0 = inlined_call_operand.vmem [shape: f32[4,8,32], index: 0, kind: input, shape index: {}]   ;;  %s2335_s1 = inlined_call_operand.vmem [shape: f32[8,32], index: 1, kind: input, shape index: {}]   ;;  %s2336_s2 = inlined_call_operand.vmem [shape: bf16[32,32], index: 2, kind: input, shape index: {}]   ;;  %s2337_s3 = inlined_call_operand.vmem [shape: f32[1,32], index: 3, kind: input, shape index: {}]   ;;  %s2338_s4 = inlined_call_operand.vmem [shape: bf16[32,32], index: 4, kind: input, shape index: {}]   ;;  %s2339_s5 = inlined_call_operand.vmem [shape: f32[1,32], index: 5, kind: input, shape index: {}]   ;;  %s2340_s6 = inlined_call_operand.vmem [shape: bf16[32,32], index: 6, kind: input, shape index: {}]   ;;  %s2341_s7 = inlined_call_operand.vmem [shape: f32[1,32], index: 7, kind: input, shape index: {}]   ;;  %s2342_s8 = inlined_call_operand.vmem [shape: bf16[32,32], index: 8, kind: input, shape index: {}]   ;;  %s2343_s9 = inlined_call_operand.vmem [shape: f32[1,32], index: 9, kind: input, shape index: {}]   ;;  %s2344_s10 = inlined_call_operand.vmem [shape: f32[1,32], index: 10, kind: input, shape index: {}]   ;;  %s2345_s11 = inlined_call_operand.vmem [shape: f32[1,32], index: 11, kind: input, shape index: {}]   ;;  %s2346_s12 = inlined_call_operand.vmem [shape: bf16[32,64], index: 12, kind: input, shape index: {}]   ;;  %s2347_s13 = inlined_call_operand.vmem [shape: f32[1,64], index: 13, kind: input, shape index: {}]   ;;  %s2348_s14 = inlined_call_operand.vmem [shape: bf16[64,32], index: 14, kind: input, shape index: {}]   ;;  %s2349_s15 = inlined_call_operand.vmem [shape: f32[1,32], index: 15, kind: input, shape index: {}]   ;;  %s2350_s16 = inlined_call_operand.vmem [shape: f32[1,32], index: 16, kind: input, shape index: {}]   ;;  %s2351_s17 = inlined_call_operand.vmem [shape: f32[1,32], index: 17, kind: input, shape index: {}]   ;;  %s2352_s18 = inlined_call_operand.vmem [shape: bf16[32,32], index: 18, kind: input, shape index: {}]   ;;  %s2353_s19 = inlined_call_operand.vmem [shape: f32[1,32], index: 19, kind: input, shape index: {}]   ;;  %s2354_s20 = inlined_call_operand.vmem [shape: bf16[32,2], index: 20, kind: input, shape index: {}]   ;;  %s2355_s21 = inlined_call_operand.vmem [shape: f32[1,2], index: 21, kind: input, shape index: {}]   ;;  %s2356_s22 = inlined_call_operand.vmem [shape: f32[4,1,2], index: 22, kind: output, shape index: {}]  }
   0x1   :  { %2360 = sst [smem:[#allocation2_spill]] %s2334_s0 }
   0x2   :  { %2361 = sst [smem:[#allocation3_spill]] %s2335_s1 }
   0x3   :  { %2362 = sst [smem:[#allocation4_spill]] %s2336_s2 }
   0x4   :  { %2363 = sst [smem:[#allocation5_spill]] %s2337_s3  ;;  %s2089_s3 = smov 0  }
   0x5   :  { %2364 = sst [smem:[#allocation6_spill]] %s2338_s4 }
   0x6   :  { %2365 = sst [smem:[#allocation7_spill]] %s2339_s5 }
   0x7   :  { %2366 = sst [smem:[#allocation8_spill]] %s2340_s6 }
   0x8 LB: > { %s1743_s28 = sadd.s32 4294967295, %s1964_s3   ;;  %p1747_p0 = scmp.ge.s32.totalorder %s1964_s3, 1  ;;  %s1964_s3 = sphi %s2089_s3, %s32_s3  }
   0x9   : > { %p613_p1 = scmp.lt.s32.totalorder %s1964_s3, 3 }
   0xb   : > { %p614_p2 = pnand %p1747_p0, %p613_p1 }
   0xc   : > { %s2367_s4 = sld [smem:[#allocation4_spill]] (!%p614_p2)  ;;  %s1748_s5 = sshll.u32 (!%p614_p2), %s1743_s28, 1 }
   0xd   : > { %617 = sbr.rel (%p614_p2) target bundleno = 2281 (0x8e9), region = 108  ;;  %s2368_s1 = sld [smem:[#allocation6_spill]] (!%p614_p2) }
   0xe   : > { %p675_p3 = scmp.lt.s32.totalorder (!%p614_p2), %s1748_s5, 3  ;;  %s2369_s30 = sld [smem:[#allocation3_spill]] (!%p614_p2) }
   0xf   : > { %s2370_s23 = sld [smem:[#allocation2_spill]] (!%p614_p2)  ;;  %s1967_s28 = smov (!%p614_p2), 120  }
  0x10   : > { %s2371_s26 = sld [smem:[#allocation5_spill]] (!%p614_p2)  ;;  %s1968_s0 = smov (!%p614_p2), 104  }
  0x11   : > { %s2372_s29 = sld [smem:[#allocation7_spill]] (!%p614_p2) }
  0x12   : > { %v1850_v0 = vld [vmem:[%s2367_s4 + $0x8] sm:$0xff]  ;;  %v1849_v2 = vld [vmem:[%s2367_s4] sm:$0xff]  ;;  %s2375_s5 = smov (!%p675_p3, %s1748_s5), 3  ;;  %vm712_vm0 = vcmask 261120   ;;  %vm804_vm1 = vcmask 64512   ;;  %s2373_s6 = sld [smem:[#allocation8_spill]] }
  0x13   : > { %v1852_v1 = vld [vmem:[%s2368_s1 + $0x8] sm:$0xff]  ;;  %722 = vmatpush.bf16.msra.mxu0 %v1850_v0  ;;  %v1851_v3 = vld [vmem:[%s2368_s1] sm:$0xff]  ;;  %s1749_s2 = sshll.u32 %s2375_s5, 3  ;;  %vm870_vm2 = vcmask 1043456   ;;  %vm1286_vm3 = vcmask 130048   ;;  %vm1289_vm4 = vcmask 195584  }
  0x14   : > { %756 = vmatpush.bf16.msra.mxu1 %v1852_v1  ;;  %v688_v4 = vld [vmem:[%s2369_s30] sm:$0xff]  ;;  %s1966_s30 = smov 112   ;;  %vm1476_vm12 = vcmask 523264  }
  0x15   : > { %s678_s24 = scalar_lea.vmem %s2370_s23, %s1749_s2 }
  0x16   : > { %v686_v5 = vld [vmem:[%s678_s24] sm:$0xff]  ;;  %v687_v6 = vld [vmem:[%s678_s24 + $0x8] sm:$0xff] }
  0x17   : > { %723 = vmatpush.bf16.msra.mxu0 %v1849_v2  ;;  %v2118_v7 = vadd.f32 %v688_v4, %v686_v5  ;;  %v2120_v8 = vadd.f32 %v688_v4, %v687_v6  ;;  %v1898_v10 = vld [vmem:[%s2371_s26] ss:$0 sm:$0xff]  ;;  %s683_s26 = scalar_lea.vmem %s2356_s22, %s2375_s5 }
  0x18   : > { %757 = vmatpush.bf16.msra.mxu1 %v1851_v3  ;;  %v1899_v11 = vld [vmem:[%s2372_s29] ss:$0 sm:$0xff]  ;;  %v1854_v47 = vld [vmem:[%s2373_s6 + $0x8] sm:$0xff]  ;;  %s1969_s29 = smov 8  }
  0x19   : > { %v2124_v9 = vpack.c.bf16 %v2120_v8, %v2118_v7  ;;  %790 = vmatpush.bf16.msra.mxu2 %v1854_v47  ;;  %v1853_v48 = vld [vmem:[%s2373_s6] sm:$0xff] }
  0x1b   : > { %1759 = vmatmul.msk.bf16.vlgmr.msra.gmra.mxu0 %vm712_vm0, %v2124_v9  ;;  %1768 = vmatmul.msk.bf16.vlgmr.msra.gmra.mxu1 %vm712_vm0, %v2124_v9 }
  0x1d   : > { %791 = vmatpush.bf16.msra.mxu2 %v1853_v48 }
  0x20   : > { %1777 = vmatmul.msk.bf16.vlgmr.msra.gmra.mxu2 %vm712_vm0, %v2124_v9 }
  0x98   : > { %v725_v12 = vpop.f32.mrf.mxu0  ;;  %v759_v13 = vpop.f32.mrf.mxu1 }
  0x99   : > { %v726_v14 = vadd.f32 %v1898_v10, %v725_v12  ;;  %v760_v15 = vadd.f32 %v1899_v11, %v759_v13  ;;  %v1900_v12 = vld [vmem:[%s2341_s7] ss:$0 sm:$0xff] }
  0x9b   : > { %v798_v16 = vpack.c.bf16 %v726_v14, %v726_v14  ;;  %v800_v17 = vpack.c.bf16 %v760_v15, %v760_v15 }
  0x9d   : > { %v907_v18 = vunpack.c.l.b16 %v798_v16  ;;  %v912_v19 = vunpack.c.l.b16 %v800_v17  ;;  %v809_v20 = vsel %vm804_vm1, %v800_v17, 0 }
  0x9e   : > { %818 = vmatpush.bf16.xpose.msra.mxu3 %v809_v20 }
  0x9f   : > { %v908_v21 = vpack.c.b16 %v907_v18, %v907_v18  ;;  %v913_v22 = vpack.c.b16 %v912_v19, %v912_v19 }
  0xa0   : > { %v727_v23 = vpop.f32.mrf.mxu0  ;;  %v761_v24 = vpop.f32.mrf.mxu1 }
  0xa1   : > { %v728_v25 = vadd.f32 %v1898_v10, %v727_v23  ;;  %v762_v26 = vadd.f32 %v1899_v11, %v761_v24  ;;  %1038 = vrot.lane.b32.xlu2 %v913_v22, %s1966_s30  ;;  %914 = vrot.lane.b32.xlu0 %v913_v22, %s1967_s28 }
  0xa2   : > { %909 = vrot.lane.b32.xlu1 %v908_v21, %s1967_s28 }
  0xa3   : > { %v799_v27 = vpack.c.bf16 %v728_v25, %v728_v25  ;;  %v801_v28 = vpack.c.bf16 %v762_v26, %v762_v26 }
  0xa5   : > { %v936_v29 = vunpack.c.l.b16 %v799_v27  ;;  %v941_v30 = vunpack.c.l.b16 %v801_v28  ;;  %1778 = vmatmul.msk.bf16.vlgmr.msra.gmra.mxu3 %vm804_vm1, %v798_v16  ;;  %v828_v31 = vsel %vm804_vm1, %v801_v28, 0  ;;  %v793_v16 = vpop.f32.mrf.mxu2 }
  0xa6   : > { %837 = vmatpush.bf16.xpose.msrb.mxu0 %v828_v31  ;;  %v794_v18 = vadd.f32 %v1900_v12, %v793_v16 }
  0xa7   : > { %v937_v32 = vpack.c.b16 %v936_v29, %v936_v29  ;;  %v942_v33 = vpack.c.b16 %v941_v30, %v941_v30 }
  0xa9   : > { %1061 = vrot.lane.b32.xlu2 %v942_v33, %s1966_s30  ;;  %943 = vrot.lane.b32.xlu0 %v942_v33, %s1967_s28 }
  0xaa   : > { %938 = vrot.lane.b32.xlu1 %v937_v32, %s1967_s28 }
  0xad   : > { %1779 = vmatmul.msk.bf16.vlgmr.msrb.gmra.mxu0 %vm804_vm1, %v799_v27  ;;  %v795_v24 = vpop.f32.mrf.mxu2 }
  0xae   : > { %v796_v26 = vadd.f32 %v1900_v12, %v795_v24 }
  0xb0   : > { %v803_v27 = vpack.c.bf16 %v796_v26, %v796_v26 }
  0xb1   : > { %1150 = vrot.lane.b32.xlu2 %v913_v22, %s1968_s0  ;;  %1036 = vrot.lane.b32.xlu0 %v908_v21, %s1966_s30 }
  0xb2   : > { %1059 = vrot.lane.b32.xlu1 %v937_v32, %s1966_s30  ;;  %v891_v28 = vsel %vm870_vm2, %v803_v27, 0 }
  0xb3   : > { %900 = vmatpush.bf16.msrb.mxu2 %v891_v28 }
  0xb9   : > { %1171 = vrot.lane.b32.xlu2 %v937_v32, %s1968_s0  ;;  %1173 = vrot.lane.b32.xlu0 %v942_v33, %s1968_s0 }
  0xba   : > { %1148 = vrot.lane.b32.xlu1 %v908_v21, %s1968_s0  ;;  %v802_v21 = vpack.c.bf16 %v794_v18, %v794_v18 }
  0xbc   : > { %v872_v22 = vsel %vm870_vm2, %v802_v21, 0  ;;  %v989_v31 = vunpack.c.l.b16 %v802_v21 }
  0xbd   : > { %881 = vmatpush.bf16.msrb.mxu1 %v872_v22 }
  0xfb   : > { %v1039_v34 = vpop.permute.xlu2 %1038 }
  0xfc   : > { %v1044_v38 = vsel %vm804_vm1, %v1039_v34, 0  ;;  %v2196_v34 = vpack.c.b16 %v989_v31, %v989_v31 }
 0x103   : > { %v1062_v35 = vpop.permute.xlu2 %1061 }
 0x104   : > { %v1067_v44 = vsel %vm804_vm1, %v1062_v35, 0 }
 0x10b   : > { %v1151_v39 = vpop.permute.xlu2 %1150 }
 0x10c   : > { %v1156_v42 = vsel %vm804_vm1, %v1151_v39, 0 }
 0x113   : > { %v915_v36 = vpop.permute.xlu0 %914  ;;  %v1172_v59 = vpop.permute.xlu2 %1171 }
 0x114   : > { %v920_v37 = vsel %vm804_vm1, %v915_v36, 0  ;;  %v910_v40 = vpop.permute.xlu1 %909 }
 0x115   : > { %929 = vmatpush.bf16.xpose.msrb.mxu3 %v920_v37  ;;  %v1013_v37 = vunpack.c.l.b16 %v803_v27 }
 0x11b   : > { %v944_v41 = vpop.permute.xlu0 %943 }
 0x11c   : > { %v949_v43 = vsel %vm804_vm1, %v944_v41, 0  ;;  %1782 = vmatmul.msk.bf16.vlgmr.msrb.gmra.mxu3 %vm804_vm1, %v910_v40  ;;  %v939_v45 = vpop.permute.xlu1 %938 }
 0x11d   : > { %1053 = vmatpush.bf16.xpose.msra.mxu3 %v1044_v38  ;;  %958 = vmatpush.bf16.xpose.msra.mxu0 %v949_v43  ;;  %v1014_v38 = vpack.c.b16 %v1013_v37, %v1013_v37 }
 0x123   : > { %v1037_v46 = vpop.permute.xlu0 %1036 }
 0x124   : > { %1783 = vmatmul.msk.bf16.vlgmr.msra.gmra.mxu0 %vm804_vm1, %v939_v45  ;;  %v1060_v56 = vpop.permute.xlu1 %1059 }
 0x125   : > { %1165 = vmatpush.bf16.xpose.msrb.mxu3 %v1156_v42  ;;  %1076 = vmatpush.bf16.xpose.msrb.mxu0 %v1067_v44 }
 0x128   : > { %v820_v49 = vpop.f32.mrf.mxu3 }
 0x129   : > { %v843_v50 = vsel %vm804_vm1, %v820_v49, -inf }
 0x12a   : > { %v839_v51 = vpop.f32.mrf.mxu0  ;;  %844 = vmax.xlane.f32.xlu1 %v843_v50 }
 0x12b   : > { %v1174_v52 = vpop.permute.xlu0 %1173  ;;  %v846_v53 = vsel %vm804_vm1, %v839_v51, -inf }
 0x12c   : > { %v1179_v54 = vsel %vm804_vm1, %v1174_v52, 0  ;;  %847 = vmax.xlane.f32.xlu0 %v846_v53  ;;  %1786 = vmatmul.msk.bf16.vlgmr.msra.gmra.mxu3 %vm804_vm1, %v1037_v46  ;;  %v1149_v58 = vpop.permute.xlu1 %1148 }
 0x12d   : > { %1188 = vmatpush.bf16.xpose.msra.mxu0 %v1179_v54 }
 0x130   : > { %v822_v55 = vpop.f32.mrf.mxu3 }
 0x132   : > { %v841_v57 = vpop.f32.mrf.mxu0 }
 0x134   : > { %1787 = vmatmul.msk.bf16.vlgmr.msrb.gmra.mxu0 %vm804_vm1, %v1060_v56 }
 0x13c   : > { %1790 = vmatmul.msk.bf16.vlgmr.msrb.gmra.mxu3 %vm804_vm1, %v1149_v58 }
 0x144   : > { %1791 = vmatmul.msk.bf16.vlgmr.msra.gmra.mxu0 %vm804_vm1, %v1172_v59 }
 0x19d   : > { %v845_v60 = vpop.xlane.xlu1 %844 }
 0x19e   : > { %v849_v0 = vsub.f32 %v820_v49, %v845_v60 }
 0x19f   : > { %v848_v61 = vpop.xlane.xlu0 %847  ;;  %v2174_v62 = vpop.f32.mrf.mxu3 }
 0x1a0   : > { %v850_v63 = vsub.f32 %v839_v51, %v848_v61  ;;  %v851_v4 = vmul.f32 1.442695, %v849_v0  ;;  %v964_v10 = vsel %vm804_vm1, %v2174_v62, -inf }
 0x1a1   : > { %v960_v1 = vpop.f32.mrf.mxu0 }
 0x1a2   : > { %v853_v2 = vmul.f32 1.442695, %v850_v63  ;;  %v967_v3 = vsel %vm804_vm1, %v960_v1, -inf }
 0x1a3   : > { %968 = vmax.xlane.f32.xlu2 %v967_v3 }
 0x1a4   : > { %1910 = vpow2.f32 %v853_v2 }
 0x1a5   : > { %1912 = vpow2.f32 %v851_v4 }
 0x1a7   : > { %v933_v5 = vpop.f32.mrf.mxu3 }
 0x1a9   : > { %v962_v6 = vpop.f32.mrf.mxu0 }
 0x1aa   : > { %v1911_v9 = vpop.eup %1910 }
 0x1ab   : > { %965 = vmax.xlane.f32.xlu2 %v964_v10  ;;  %v858_v11 = vsel %vm804_vm1, %v1911_v9, 0.0  ;;  %v2183_v13 = vpop.eup %1912 }
 0x1ac   : > { %859 = vadd.xlane.f32.xlu0 %v858_v11  ;;  %v855_v19 = vsel %vm804_vm1, %v2183_v13, 0.0 }
 0x1af   : > { %v1055_v14 = vpop.f32.mrf.mxu3 }
 0x1b0   : > { %v1082_v15 = vsel %vm804_vm1, %v1055_v14, -inf }
 0x1b1   : > { %v1078_v17 = vpop.f32.mrf.mxu0  ;;  %1083 = vmax.xlane.f32.xlu1 %v1082_v15 }
 0x1b2   : > { %v1085_v20 = vsel %vm804_vm1, %v1078_v17, -inf }
 0x1b3   : > { %856 = vadd.xlane.f32.xlu2 %v855_v19 }
 0x1b4   : > { %1086 = vmax.xlane.f32.xlu0 %v1085_v20 }
 0x1b7   : > { %v1057_v23 = vpop.f32.mrf.mxu3 }
 0x1b9   : > { %v1080_v25 = vpop.f32.mrf.mxu0 }
 0x1bf   : > { %v2191_v29 = vpop.f32.mrf.mxu3 }
 0x1c0   : > { %v1194_v30 = vsel %vm804_vm1, %v2191_v29, -inf }
 0x1c1   : > { %v1190_v32 = vpop.f32.mrf.mxu0  ;;  %1195 = vmax.xlane.f32.xlu1 %v1194_v30 }
 0x1c2   : > { %v1197_v33 = vsel %vm804_vm1, %v1190_v32, -inf }
 0x1c3   : > { %1198 = vmax.xlane.f32.xlu2 %v1197_v33 }
 0x1c7   : > { %v1169_v35 = vpop.f32.mrf.mxu3 }
 0x1c8   : > { %991 = vrot.lane.b32.xlu0 %v2196_v34, %s1967_s28 }
 0x1c9   : > { %v1192_v36 = vpop.f32.mrf.mxu0 }
 0x1da   : > { %1127 = vrot.lane.b32.xlu1 %v1014_v38, %s1966_s30 }
 0x1db   : > { %1015 = vrot.lane.b32.xlu2 %v1014_v38, %s1967_s28  ;;  %s1971_s28 = smov 24  }
 0x216   : > { %v969_v39 = vpop.xlane.xlu2 %968 }
 0x217   : > { %v971_v40 = vsub.f32 %v960_v1, %v969_v39 }
 0x219   : > { %v974_v41 = vmul.f32 1.442695, %v971_v40 }
 0x21b   : > { %1914 = vpow2.f32 %v974_v41 }
 0x21e   : > { %v966_v42 = vpop.xlane.xlu2 %965 }
 0x21f   : > { %v970_v43 = vsub.f32 %v2174_v62, %v966_v42  ;;  %v860_v44 = vpop.xlane.xlu0 %859 }
 0x220   : > { %1916 = vrcp.f32 %v860_v44 }
 0x221   : > { %v1915_v45 = vpop.eup %1914  ;;  %v972_v46 = vmul.f32 1.442695, %v970_v43 }
 0x222   : > { %v979_v47 = vsel %vm804_vm1, %v1915_v45, 0.0 }
 0x223   : > { %1918 = vpow2.f32 %v972_v46  ;;  %980 = vadd.xlane.f32.xlu0 %v979_v47 }
 0x224   : > { %v1084_v48 = vpop.xlane.xlu1 %1083 }
 0x225   : > { %v1088_v49 = vsub.f32 %v1055_v14, %v1084_v48 }
 0x226   : > { %v1917_v50 = vpop.eup %1916  ;;  %v857_v51 = vpop.xlane.xlu2 %856 }
 0x227   : > { %v864_v52 = vmul.f32 %v1917_v50, %v1911_v9  ;;  %v1090_v53 = vmul.f32 1.442695, %v1088_v49  ;;  %1920 = vrcp.f32 %v857_v51  ;;  %v1087_v54 = vpop.xlane.xlu0 %1086 }
 0x228   : > { %v1089_v56 = vsub.f32 %v1078_v17, %v1087_v54 }
 0x229   : > { %v1919_v55 = vpop.eup %1918  ;;  %1922 = vpow2.f32 %v1090_v53  ;;  %v866_v57 = vpack.c.bf16 %v864_v52, %v864_v52 }
 0x22a   : > { %v976_v58 = vsel %vm804_vm1, %v1919_v55, 0.0  ;;  %v1092_v60 = vmul.f32 1.442695, %v1089_v56 }
 0x22b   : > { %1781 = vmatmul.msk.bf16.vlgmr.msrb.gmra.mxu2 %vm804_vm1, %v866_v57  ;;  %977 = vadd.xlane.f32.xlu1 %v976_v58 }
 0x22c   : > { %1924 = vpow2.f32 %v1092_v60 }
 0x22d   : > { %v1921_v59 = vpop.eup %1920 }
 0x22e   : > { %v863_v61 = vmul.f32 %v1921_v59, %v2183_v13 }
 0x22f   : > { %v1923_v62 = vpop.eup %1922 }
 0x230   : > { %v865_v63 = vpack.c.bf16 %v863_v61, %v863_v61  ;;  %v1094_v0 = vsel %vm804_vm1, %v1923_v62, 0.0 }
 0x232   : > { %1780 = vmatmul.msk.bf16.vlgmr.msrb.gmra.mxu1 %vm804_vm1, %v865_v63  ;;  %v1925_v2 = vpop.eup %1924 }
 0x233   : > { %1095 = vadd.xlane.f32.xlu1 %v1094_v0  ;;  %v1097_v5 = vsel %vm804_vm1, %v1925_v2, 0.0 }
 0x234   : > { %v1196_v14 = vpop.xlane.xlu1 %1195 }
 0x235   : > { %v1200_v17 = vsub.f32 %v2191_v29, %v1196_v14 }
 0x236   : > { %v1199_v1 = vpop.xlane.xlu2 %1198 }
 0x237   : > { %v1201_v3 = vsub.f32 %v1190_v32, %v1199_v1  ;;  %1106 = vrot.lane.b32.xlu0 %v2196_v34, %s1966_s30  ;;  %v1202_v18 = vmul.f32 1.442695, %v1200_v17  ;;  %s1970_s30 = smov 16  }
 0x239   : > { %v1204_v4 = vmul.f32 1.442695, %v1201_v3 }
 0x23a   : > { %v992_v11 = vpop.permute.xlu0 %991 }
 0x23b   : > { %1926 = vpow2.f32 %v1204_v4  ;;  %1098 = vadd.xlane.f32.xlu1 %v1097_v5  ;;  %v997_v13 = vsel %vm870_vm2, %v992_v11, 0 }
 0x23c   : > { %1006 = vmatpush.bf16.msra.mxu1 %v997_v13  ;;  %1928 = vpow2.f32 %v1202_v18 }
 0x23e   : > { %v1016_v6 = vpop.permute.xlu2 %1015 }
 0x23f   : > { %v1021_v9 = vsel %vm870_vm2, %v1016_v6, 0  ;;  %v1856_v6 = vld [vmem:[%s2342_s8 + $0x8] sm:$0xff] }
 0x240   : > { %1030 = vmatpush.bf16.msra.mxu2 %v1021_v9  ;;  %1322 = vmatpush.bf16.msra.mxu3 %v1856_v6  ;;  %v1855_v9 = vld [vmem:[%s2342_s8] sm:$0xff] }
 0x241   : > { %v1927_v10 = vpop.eup %1926 }
 0x242   : > { %v1209_v12 = vsel %vm804_vm1, %v1927_v10, 0.0  ;;  %v1929_v19 = vpop.eup %1928 }
 0x243   : > { %1210 = vadd.xlane.f32.xlu2 %v1209_v12  ;;  %v1206_v20 = vsel %vm804_vm1, %v1929_v19, 0.0 }
 0x244   : > { %1323 = vmatpush.bf16.msra.mxu3 %v1855_v9 }
 0x24c   : > { %v1128_v15 = vpop.permute.xlu1 %1127 }
 0x24d   : > { %v1133_v16 = vsel %vm870_vm2, %v1128_v15, 0 }
 0x24e   : > { %1142 = vmatpush.bf16.msrb.mxu2 %v1133_v16 }
 0x254   : > { %1239 = vrot.lane.b32.xlu1 %v1014_v38, %s1968_s0 }
 0x25c   : > { %1218 = vrot.lane.b32.xlu1 %v2196_v34, %s1968_s0 }
 0x261   : > { %1207 = vadd.xlane.f32.xlu0 %v1206_v20 }
 0x296   : > { %v981_v21 = vpop.xlane.xlu0 %980 }
 0x297   : > { %1930 = vrcp.f32 %v981_v21 }
 0x29d   : > { %v1931_v22 = vpop.eup %1930 }
 0x29e   : > { %v985_v23 = vmul.f32 %v1931_v22, %v1915_v45  ;;  %v978_v24 = vpop.xlane.xlu1 %977 }
 0x29f   : > { %1932 = vrcp.f32 %v978_v24 }
 0x2a0   : > { %v987_v25 = vpack.c.bf16 %v985_v23, %v985_v23 }
 0x2a2   : > { %1785 = vmatmul.msk.bf16.vlgmr.msra.gmra.mxu2 %vm804_vm1, %v987_v25 }
 0x2a5   : > { %v1933_v26 = vpop.eup %1932 }
 0x2a6   : > { %v984_v27 = vmul.f32 %v1933_v26, %v1919_v55  ;;  %v1096_v28 = vpop.xlane.xlu1 %1095  ;;  %v1901_v26 = vld [vmem:[%s2343_s9] ss:$0 sm:$0xff] }
 0x2a7   : > { %1934 = vrcp.f32 %v1096_v28 }
 0x2a8   : > { %v986_v29 = vpack.c.bf16 %v984_v27, %v984_v27 }
 0x2a9   : > { %v1107_v30 = vpop.permute.xlu0 %1106 }
 0x2aa   : > { %v1112_v31 = vsel %vm870_vm2, %v1107_v30, 0  ;;  %1784 = vmatmul.msk.bf16.vlgmr.msra.gmra.mxu1 %vm804_vm1, %v986_v29 }
 0x2ab   : > { %1121 = vmatpush.bf16.msrb.mxu1 %v1112_v31 }
 0x2ad   : > { %v1935_v35 = vpop.eup %1934 }
 0x2ae   : > { %v902_v32 = vpop.f32.mrf.mxu2  ;;  %v1099_v33 = vpop.xlane.xlu1 %1098  ;;  %v1102_v36 = vmul.f32 %v1935_v35, %v1923_v62 }
 0x2af   : > { %1936 = vrcp.f32 %v1099_v33  ;;  %v883_v34 = vpop.f32.mrf.mxu1 }
 0x2b0   : > { %v1104_v41 = vpack.c.bf16 %v1102_v36, %v1102_v36 }
 0x2b5   : > { %v1937_v37 = vpop.eup %1936 }
 0x2b6   : > { %v1103_v38 = vmul.f32 %v1937_v37, %v1925_v2  ;;  %v904_v39 = vpop.f32.mrf.mxu2  ;;  %v1211_v43 = vpop.xlane.xlu2 %1210 }
 0x2b7   : > { %v885_v40 = vpop.f32.mrf.mxu1  ;;  %1938 = vrcp.f32 %v1211_v43 }
 0x2b8   : > { %v1105_v42 = vpack.c.bf16 %v1103_v38, %v1103_v38  ;;  %v1972_v38 = vmov 32.0  }
 0x2ba   : > { %1788 = vmatmul.msk.bf16.vlgmr.msrb.gmra.mxu1 %vm804_vm1, %v1104_v41  ;;  %1789 = vmatmul.msk.bf16.vlgmr.msrb.gmra.mxu2 %vm804_vm1, %v1105_v42 }
 0x2bd   : > { %v1939_v44 = vpop.eup %1938 }
 0x2be   : > { %v1215_v45 = vmul.f32 %v1939_v44, %v1927_v10 }
 0x2c0   : > { %v1217_v48 = vpack.c.bf16 %v1215_v45, %v1215_v45 }
 0x2c6   : > { %v1240_v46 = vpop.permute.xlu1 %1239 }
 0x2c7   : > { %v1245_v47 = vsel %vm870_vm2, %v1240_v46, 0 }
 0x2c8   : > { %1254 = vmatpush.bf16.msra.mxu2 %v1245_v47 }
 0x2cb   : > { %1793 = vmatmul.msk.bf16.vlgmr.msra.gmra.mxu2 %vm804_vm1, %v1217_v48 }
 0x2ce   : > { %v1219_v49 = vpop.permute.xlu1 %1218 }
 0x2cf   : > { %v1224_v50 = vsel %vm870_vm2, %v1219_v49, 0  ;;  %v1858_v49 = vld [vmem:[%s2346_s12 + $0x8] sm:$0xff] }
 0x2d0   : > { %1233 = vmatpush.bf16.msra.mxu1 %v1224_v50  ;;  %1429 = vmatpush.bf16.msrb.mxu0 %v1858_v49 }
 0x2d4   : > { %v1208_v51 = vpop.xlane.xlu0 %1207 }
 0x2d5   : > { %1940 = vrcp.f32 %v1208_v51 }
 0x2d6   : > { %1942 = vrcp.f32 %v1972_v38 }
 0x2db   : > { %v1941_v52 = vpop.eup %1940 }
 0x2dc   : > { %v1214_v53 = vmul.f32 %v1941_v52, %v1929_v19  ;;  %v1943_v39 = vpop.eup %1942  ;;  %v1857_v52 = vld [vmem:[%s2346_s12] sm:$0xff] }
 0x2dd   : > { %v1341_v40 = vmul.f32 32.0, %v1943_v39  ;;  %vm1345_vm5 = vweird.f32 %v1943_v39  ;;  %1430 = vmatpush.bf16.msrb.mxu0 %v1857_v52 }
 0x2de   : > { %v1216_v54 = vpack.c.bf16 %v1214_v53, %v1214_v53 }
 0x2df   : > { %v1342_v41 = vsub.f32 1.0, %v1341_v40 }
 0x2e0   : > { %1792 = vmatmul.msk.bf16.vlgmr.msra.gmra.mxu1 %vm804_vm1, %v1216_v54 }
 0x325   : > { %v1032_v55 = vpop.f32.mrf.mxu2 }
 0x327   : > { %v1008_v56 = vpop.f32.mrf.mxu1 }
 0x328   : > { %v1883_v57 = vpack.i.bf16 %v1032_v55, %v1008_v56 }
 0x32a   : > { %1884 = vrot.lane.b32.xlu1 %v1883_v57, %s1969_s29 }
 0x32d   : > { %v1034_v58 = vpop.f32.mrf.mxu2 }
 0x32f   : > { %v1010_v59 = vpop.f32.mrf.mxu1 }
 0x337   : > { %v1123_v60 = vpop.f32.mrf.mxu1 }
 0x33d   : > { %v1144_v61 = vpop.f32.mrf.mxu2 }
 0x33e   : > { %v1888_v62 = vpack.i.bf16 %v1144_v61, %v1123_v60 }
 0x33f   : > { %v1125_v63 = vpop.f32.mrf.mxu1 }
 0x340   : > { %1889 = vrot.lane.b32.xlu2 %v1888_v62, %s1970_s30 }
 0x345   : > { %v1146_v0 = vpop.f32.mrf.mxu2 }
 0x34e   : > { %v1256_v1 = vpop.f32.mrf.mxu2 }
 0x356   : > { %v1258_v2 = vpop.f32.mrf.mxu2 }
 0x35d   : > { %v1235_v3 = vpop.f32.mrf.mxu1 }
 0x35e   : > { %v1893_v4 = vpack.i.bf16 %v1256_v1, %v1235_v3 }
 0x360   : > { %1894 = vrot.lane.b32.xlu1 %v1893_v4, %s1971_s28 }
 0x365   : > { %v1237_v5 = vpop.f32.mrf.mxu1 }
 0x39a   : > { %v1890_v13 = vpop.permute.xlu2 %1889 }
 0x39b   : > { %v1892_v16 = vunpack.i.h.bf16 %v1890_v13  ;;  %v1891_v17 = vunpack.i.l.bf16 %v1890_v13 }
 0x39c   : > { %v1885_v10 = vpop.permute.xlu1 %1884 }
 0x39d   : > { %v1887_v11 = vunpack.i.h.bf16 %v1885_v10  ;;  %v1886_v12 = vunpack.i.l.bf16 %v1885_v10 }
 0x39f   : > { %v1285_v14 = vsel %vm804_vm1, %v902_v32, %v1887_v11  ;;  %v1284_v15 = vsel %vm804_vm1, %v883_v34, %v1886_v12  ;;  %v1902_v11 = vld [vmem:[%s2344_s10] ss:$0 sm:$0xff] }
 0x3a0   : > { %v1287_v21 = vsel %vm1286_vm3, %v1284_v15, %v1891_v17  ;;  %v1288_v22 = vsel %vm1286_vm3, %v1285_v14, %v1892_v16 }
 0x3d2   : > { %v1895_v18 = vpop.permute.xlu1 %1894 }
 0x3d3   : > { %v1897_v19 = vunpack.i.h.bf16 %v1895_v18  ;;  %v1896_v20 = vunpack.i.l.bf16 %v1895_v18  ;;  %v1903_v18 = vld [vmem:[%s2345_s11] ss:$0 sm:$0xff] }
 0x3d5   : > { %v1290_v23 = vsel %vm1289_vm4, %v1287_v21, %v1896_v20  ;;  %v1291_v24 = vsel %vm1289_vm4, %v1288_v22, %v1897_v19 }
 0x3d6   : > { %v1292_v25 = vpack.c.bf16 %v1291_v24, %v1290_v23  ;;  %v1862_v23 = vld [vmem:[%s2348_s14 + $0x18] sm:$0xff]  ;;  %v1861_v24 = vld [vmem:[%s2348_s14 + $0x10] sm:$0xff] }
 0x3d7   : > { %1484 = vmatpush.bf16.msrb.mxu1 %v1862_v23 }
 0x3d8   : > { %1802 = vmatmul.msk.bf16.vlgmr.msra.gmra.mxu3 %vm712_vm0, %v1292_v25  ;;  %v1860_v25 = vld [vmem:[%s2348_s14 + $0x8] sm:$0xff] }
 0x3db   : > { %1485 = vmatpush.bf16.msrb.mxu1 %v1861_v24 }
 0x3df   : > { %1486 = vmatpush.bf16.msrb.mxu1 %v1860_v25 }
 0x45b   : > { %v1325_v27 = vpop.f32.mrf.mxu3 }
 0x45c   : > { %v1326_v28 = vadd.f32 %v1901_v26, %v1325_v27 }
 0x45e   : > { %v1330_v29 = vadd.f32 %v1326_v28, %v2118_v7  ;;  %v1904_v28 = vld [vmem:[%s2347_s13] ss:$0 sm:$0xff] }
 0x460   : > { %v1334_v30 = vsel %vm712_vm0, %v1330_v29, 0.0  ;;  %v1349_v33 = vmul.f32 %v1330_v29, %v1330_v29 }
 0x461   : > { %1335 = vadd.xlane.f32.xlu0 %v1334_v30 }
 0x462   : > { %v1351_v36 = vsel %vm712_vm0, %v1349_v33, 0.0 }
 0x463   : > { %v1327_v31 = vpop.f32.mrf.mxu3 }
 0x464   : > { %v1328_v32 = vadd.f32 %v1901_v26, %v1327_v31  ;;  %v1859_v26 = vld [vmem:[%s2348_s14] sm:$0xff] }
 0x465   : > { %1487 = vmatpush.bf16.msrb.mxu1 %v1859_v26 }
 0x466   : > { %v2245_v34 = vadd.f32 %v1328_v32, %v2120_v8  ;;  %v1343_v8 = vmul.f32 %v1943_v39, %v1342_v41 }
 0x468   : > { %v1337_v35 = vsel %vm712_vm0, %v2245_v34, 0.0  ;;  %v1350_v37 = vmul.f32 %v2245_v34, %v2245_v34  ;;  %v1344_v42 = vadd.f32 %v1943_v39, %v1343_v8 }
 0x469   : > { %1338 = vadd.xlane.f32.xlu1 %v1337_v35  ;;  %1352 = vadd.xlane.f32.xlu0 %v1351_v36  ;;  %v1905_v35 = vld [vmem:[%s2349_s15] ss:$0 sm:$0xff] }
 0x46a   : > { %v1354_v7 = vsel %vm712_vm0, %v1350_v37, 0.0  ;;  %v2253_v44 = vsel %vm1345_vm5, %v1943_v39, %v1344_v42  ;;  %vm1593_vm5 = vcmask 1041409  }
 0x471   : > { %1355 = vadd.xlane.f32.xlu0 %v1354_v7 }
 0x4d4   : > { %v1336_v43 = vpop.xlane.xlu0 %1335 }
 0x4d5   : > { %v1347_v45 = vmul.f32 %v2253_v44, %v1336_v43 }
 0x4d7   : > { %v1359_v47 = vmul.f32 %v1347_v45, %v1347_v45  ;;  %v1363_v9 = vsub.f32 %v1330_v29, %v1347_v45 }
 0x4dc   : > { %v1353_v46 = vpop.xlane.xlu0 %1352  ;;  %v1339_v50 = vpop.xlane.xlu1 %1338 }
 0x4dd   : > { %v1357_v48 = vmul.f32 %v1353_v46, %v2253_v44  ;;  %v1348_v53 = vmul.f32 %v2253_v44, %v1339_v50 }
 0x4df   : > { %v1361_v51 = vsub.f32 %v1357_v48, %v1359_v47  ;;  %v1360_v56 = vmul.f32 %v1348_v53, %v1348_v53  ;;  %v1364_v14 = vsub.f32 %v2245_v34, %v1348_v53 }
 0x4e1   : > { %v1365_v54 = vadd.f32 1e-05, %v1361_v51 }
 0x4e3   : > { %1944 = vrsqrt.f32 %v1365_v54  ;;  %vm1373_vm7 = vweird.f32 %v1365_v54 }
 0x4e4   : > { %v1356_v55 = vpop.xlane.xlu0 %1355 }
 0x4e5   : > { %v1358_v57 = vmul.f32 %v1356_v55, %v2253_v44 }
 0x4e7   : > { %v1362_v58 = vsub.f32 %v1358_v57, %v1360_v56 }
 0x4e9   : > { %v1945_v59 = vpop.eup %1944  ;;  %v1366_v60 = vadd.f32 1e-05, %v1362_v58 }
 0x4ea   : > { %v1368_v61 = vmul.f32 %v1945_v59, %v1365_v54  ;;  %vm1374_vm6 = vweird.f32 %v1945_v59 }
 0x4eb   : > { %1946 = vrsqrt.f32 %v1366_v60  ;;  %vm1375_vm8 = vmor %vm1373_vm7, %vm1374_vm6  ;;  %vm1383_vm10 = vweird.f32 %v1366_v60  ;;  %vm1662_vm6 = vcmask 9216  }
 0x4ec   : > { %v1369_v62 = vmul.f32 %v1945_v59, %v1368_v61 }
 0x4ee   : > { %v1370_v63 = vmul.f32 0.5, %v1369_v62 }
 0x4f0   : > { %v1371_v0 = vsub.f32 1.5, %v1370_v63 }
 0x4f1   : > { %v1947_v1 = vpop.eup %1946 }
 0x4f2   : > { %v1372_v2 = vmul.f32 %v1945_v59, %v1371_v0  ;;  %v1378_v3 = vmul.f32 %v1947_v1, %v1366_v60  ;;  %vm1384_vm9 = vweird.f32 %v1947_v1 }
 0x4f3   : > { %vm1385_vm11 = vmor %vm1383_vm10, %vm1384_vm9  ;;  %vm1690_vm10 = vcmask 8192  }
 0x4f4   : > { %v1379_v4 = vmul.f32 %v1947_v1, %v1378_v3  ;;  %v1376_v5 = vsel %vm1375_vm8, %v1945_v59, %v1372_v2  ;;  %v1864_v3 = vld [vmem:[%s2352_s18 + $0x8] sm:$0xff] }
 0x4f5   : > { %v1387_v12 = vmul.f32 %v1376_v5, %v1363_v9  ;;  %v1906_v5 = vld [vmem:[%s2350_s16] ss:$0 sm:$0xff]  ;;  %1617 = vmatpush.bf16.msrb.mxu2 %v1864_v3 }
 0x4f6   : > { %v1380_v6 = vmul.f32 0.5, %v1379_v4  ;;  %v1907_v9 = vld [vmem:[%s2351_s17] ss:$0 sm:$0xff] }
 0x4f7   : > { %v1392_v16 = vmul.f32 %v1902_v11, %v1387_v12  ;;  %v1973_v12 = vmov 8.0  }
 0x4f8   : > { %v1381_v10 = vsub.f32 1.5, %v1380_v6 }
 0x4f9   : > { %v1397_v20 = vadd.f32 %v1903_v18, %v1392_v16 }
 0x4fa   : > { %v1382_v13 = vmul.f32 %v1947_v1, %v1381_v10 }
 0x4fc   : > { %v1386_v15 = vsel %vm1385_vm11, %v1947_v1, %v1382_v13 }
 0x4fd   : > { %v1388_v17 = vmul.f32 %v1386_v15, %v1364_v14 }
 0x4ff   : > { %v1393_v19 = vmul.f32 %v1902_v11, %v1388_v17 }
 0x501   : > { %v1398_v21 = vadd.f32 %v1903_v18, %v1393_v19 }
 0x503   : > { %v1399_v22 = vpack.c.bf16 %v1398_v21, %v1397_v20 }
 0x505   : > { %1811 = vmatmul.msk.bf16.vlgmr.msrb.gmra.mxu0 %vm712_vm0, %v1399_v22 }
 0x582   : > { %v1432_v27 = vpop.f32.mrf.mxu0 }
 0x583   : > { %v1433_v29 = vadd.f32 %v1904_v28, %v1432_v27 }
 0x585   : > { %v1437_v32 = vmax.f32 %v1433_v29, 0.0 }
 0x58a   : > { %v1434_v30 = vpop.f32.mrf.mxu0 }
 0x58b   : > { %v1435_v31 = vadd.f32 %v1904_v28, %v1434_v30 }
 0x58d   : > { %v1438_v33 = vmax.f32 %v1435_v31, 0.0 }
 0x58f   : > { %v1439_v34 = vpack.c.bf16 %v1438_v33, %v1437_v32 }
 0x591   : > { %1828 = vmatmul.msk.bf16.vlgmr.msrb.gmra.mxu1 %vm1476_vm12, %v1439_v34 }
 0x60e   : > { %v1489_v36 = vpop.f32.mrf.mxu1 }
 0x60f   : > { %v1490_v37 = vadd.f32 %v1905_v35, %v1489_v36 }
 0x611   : > { %v1494_v7 = vadd.f32 %v1490_v37, %v1397_v20 }
 0x613   : > { %v1498_v38 = vsel %vm712_vm0, %v1494_v7, 0.0  ;;  %v1506_v39 = vmul.f32 %v1494_v7, %v1494_v7 }
 0x614   : > { %1499 = vadd.xlane.f32.xlu2 %v1498_v38 }
 0x615   : > { %v1508_v40 = vsel %vm712_vm0, %v1506_v39, 0.0 }
 0x616   : > { %v1491_v41 = vpop.f32.mrf.mxu1  ;;  %1509 = vadd.xlane.f32.xlu0 %v1508_v40 }
 0x617   : > { %v1492_v8 = vadd.f32 %v1905_v35, %v1491_v41 }
 0x619   : > { %v1495_v42 = vadd.f32 %v1492_v8, %v1398_v21 }
 0x61b   : > { %v1501_v43 = vsel %vm712_vm0, %v1495_v42, 0.0  ;;  %v1507_v45 = vmul.f32 %v1495_v42, %v1495_v42 }
 0x61d   : > { %v1511_v46 = vsel %vm712_vm0, %v1507_v45, 0.0 }
 0x61e   : > { %1502 = vadd.xlane.f32.xlu0 %v1501_v43 }
 0x626   : > { %1512 = vadd.xlane.f32.xlu0 %v1511_v46 }
 0x687   : > { %v1500_v47 = vpop.xlane.xlu2 %1499 }
 0x688   : > { %v1504_v48 = vmul.f32 %v1500_v47, %v2253_v44 }
 0x689   : > { %v1510_v49 = vpop.xlane.xlu0 %1509 }
 0x68a   : > { %v1516_v50 = vmul.f32 %v1504_v48, %v1504_v48  ;;  %v1514_v51 = vmul.f32 %v1510_v49, %v2253_v44  ;;  %v1520_v4 = vsub.f32 %v1494_v7, %v1504_v48 }
 0x68c   : > { %v1518_v52 = vsub.f32 %v1514_v51, %v1516_v50 }
 0x68e   : > { %v1522_v53 = vadd.f32 1e-05, %v1518_v52  ;;  %v1866_v52 = vld [vmem:[%s2354_s20 + $0x8] sm:$0xff] }
 0x68f   : > { %1655 = vmatpush.bf16.msrb.mxu3 %v1866_v52 }
 0x690   : > { %1948 = vrsqrt.f32 %v1522_v53  ;;  %vm1530_vm14 = vweird.f32 %v1522_v53 }
 0x691   : > { %v1503_v54 = vpop.xlane.xlu0 %1502 }
 0x692   : > { %v1505_v56 = vmul.f32 %v1503_v54, %v2253_v44  ;;  %v1908_v54 = vld [vmem:[%s2353_s19] ss:$0 sm:$0xff] }
 0x694   : > { %v1517_v60 = vmul.f32 %v1505_v56, %v1505_v56  ;;  %v1521_v25 = vsub.f32 %v1495_v42, %v1505_v56 }
 0x696   : > { %v1949_v55 = vpop.eup %1948 }
 0x697   : > { %v1525_v57 = vmul.f32 %v1949_v55, %v1522_v53  ;;  %vm1531_vm13 = vweird.f32 %v1949_v55  ;;  %v1865_v53 = vld [vmem:[%s2354_s20] sm:$0xff] }
 0x698   : > { %vm1532_vm15 = vmor %vm1530_vm14, %vm1531_vm13  ;;  %1656 = vmatpush.bf16.msrb.mxu3 %v1865_v53 }
 0x699   : > { %v1526_v58 = vmul.f32 %v1949_v55, %v1525_v57  ;;  %v1513_v59 = vpop.xlane.xlu0 %1512 }
 0x69a   : > { %v1515_v61 = vmul.f32 %v1513_v59, %v2253_v44  ;;  %v1863_v44 = vld [vmem:[%s2352_s18] sm:$0xff] }
 0x69b   : > { %v1527_v62 = vmul.f32 0.5, %v1526_v58  ;;  %1618 = vmatpush.bf16.msrb.mxu2 %v1863_v44 }
 0x69c   : > { %v1519_v63 = vsub.f32 %v1515_v61, %v1517_v60  ;;  %v1909_v60 = vld [vmem:[%s2355_s21] ss:$0 sm:$0xff] }
 0x69d   : > { %v1528_v0 = vsub.f32 1.5, %v1527_v62 }
 0x69e   : > { %v1523_v1 = vadd.f32 1e-05, %v1519_v63 }
 0x69f   : > { %v1529_v2 = vmul.f32 %v1949_v55, %v1528_v0 }
 0x6a0   : > { %1950 = vrsqrt.f32 %v1523_v1  ;;  %vm1540_vm2 = vweird.f32 %v1523_v1 }
 0x6a1   : > { %v1533_v6 = vsel %vm1532_vm15, %v1949_v55, %v1529_v2  ;;  %1952 = vrcp.f32 %v1973_v12 }
 0x6a2   : > { %v1544_v10 = vmul.f32 %v1533_v6, %v1520_v4 }
 0x6a4   : > { %v1549_v11 = vmul.f32 %v1906_v5, %v1544_v10 }
 0x6a6   : > { %v1951_v13 = vpop.eup %1950  ;;  %v1554_v14 = vadd.f32 %v1907_v9, %v1549_v11 }
 0x6a7   : > { %v1535_v15 = vmul.f32 %v1951_v13, %v1523_v1  ;;  %v1953_v19 = vpop.eup %1952  ;;  %vm1541_vm1 = vweird.f32 %v1951_v13 }
 0x6a8   : > { %v1556_v16 = vsel %vm712_vm0, %v1554_v14, 0.0  ;;  %v1571_v23 = vmul.f32 8.0, %v1953_v19  ;;  %vm1542_vm3 = vmor %vm1540_vm2, %vm1541_vm1  ;;  %vm1575_vm4 = vweird.f32 %v1953_v19 }
 0x6a9   : > { %v1557_v17 = vrot.slane %v1556_v16, 4  ;;  %v1536_v18 = vmul.f32 %v1951_v13, %v1535_v15 }
 0x6aa   : > { %v1572_v29 = vsub.f32 1.0, %v1571_v23 }
 0x6ab   : > { %v1537_v20 = vmul.f32 0.5, %v1536_v18  ;;  %v1558_v21 = vadd.f32 %v1557_v17, %v1556_v16 }
 0x6ac   : > { %v1573_v33 = vmul.f32 %v1953_v19, %v1572_v29 }
 0x6ad   : > { %v1538_v22 = vsub.f32 1.5, %v1537_v20  ;;  %v1559_v26 = vrot.slane %v1558_v21, 2 }
 0x6ae   : > { %v1574_v37 = vadd.f32 %v1953_v19, %v1573_v33 }
 0x6af   : > { %v1539_v24 = vmul.f32 %v1951_v13, %v1538_v22  ;;  %v1560_v31 = vadd.f32 %v1559_v26, %v1558_v21 }
 0x6b0   : > { %v1576_v40 = vsel %vm1575_vm4, %v1953_v19, %v1574_v37 }
 0x6b1   : > { %v1543_v27 = vsel %vm1542_vm3, %v1951_v13, %v1539_v24  ;;  %v1561_v36 = vrot.slane %v1560_v31, 1 }
 0x6b2   : > { %v1545_v28 = vmul.f32 %v1543_v27, %v1521_v25 }
 0x6b3   : > { %v1562_v39 = vadd.f32 %v1561_v36, %v1560_v31 }
 0x6b4   : > { %v1550_v30 = vmul.f32 %v1906_v5, %v1545_v28 }
 0x6b5   : > { %v1577_v42 = vmul.f32 %v1576_v40, %v1562_v39 }
 0x6b6   : > { %v1555_v32 = vadd.f32 %v1907_v9, %v1550_v30 }
 0x6b7   : > { %v1579_v46 = vpack.c.bf16 %v1577_v42, %v1577_v42 }
 0x6b8   : > { %v1563_v34 = vsel %vm712_vm0, %v1555_v32, 0.0 }
 0x6b9   : > { %v1564_v35 = vrot.slane %v1563_v34, 4  ;;  %v1591_v48 = vunpack.c.l.b16 %v1579_v46 }
 0x6bb   : > { %v1565_v7 = vadd.f32 %v1564_v35, %v1563_v34 }
 0x6bd   : > { %v1566_v38 = vrot.slane %v1565_v7, 2 }
 0x6bf   : > { %v1567_v41 = vadd.f32 %v1566_v38, %v1565_v7 }
 0x6c1   : > { %v1568_v8 = vrot.slane %v1567_v41, 1 }
 0x6c3   : > { %v1569_v43 = vadd.f32 %v1568_v8, %v1567_v41 }
 0x6c5   : > { %v1578_v45 = vmul.f32 %v1576_v40, %v1569_v43 }
 0x6c7   : > { %v1580_v47 = vpack.c.bf16 %v1578_v45, %v1578_v45 }
 0x6c9   : > { %v1592_v49 = vunpack.c.l.b16 %v1580_v47 }
 0x6cb   : > { %v1594_v50 = vsel %vm1593_vm5, %v1592_v49, %v1591_v48 }
 0x6cc   : > { %v1595_v51 = vpack.c.b16 %v1594_v50, %v1594_v50 }
 0x6ce   : > { %1837 = vmatmul.msk.bf16.vlgmr.msrb.gmra.mxu2 %vm712_vm0, %v1595_v51 }
 0x751   : > { %v1620_v55 = vpop.f32.mrf.mxu2 }
 0x752   : > { %v1621_v56 = vadd.f32 %v1908_v54, %v1620_v55 }
 0x754   : > { %v1624_v57 = vmax.f32 %v1621_v56, 0.0 }
 0x756   : > { %v1625_v58 = vpack.c.bf16 %v1624_v57, %v1624_v57 }
 0x758   : > { %1846 = vmatmul.msk.bf16.vlgmr.msrb.gmra.mxu3 %vm712_vm0, %v1625_v58 }
 0x759   : > { %v1622_v59 = vpop.f32.mrf.mxu2 }
 0x7db   : > { %v1658_v61 = vpop.f32.mrf.mxu3 }
 0x7dc   : > { %v1659_v62 = vadd.f32 %v1909_v60, %v1658_v61 }
 0x7de   : > { %v1663_v63 = vsel %vm1662_vm6, %v1659_v62, -inf }
 0x7df   : > { %1664 = vmax.xlane.f32.xlu1 %v1663_v63 }
 0x7e3   : > { %v1660_v0 = vpop.f32.mrf.mxu3 }
 0x852   : > { %v1665_v1 = vpop.xlane.xlu1 %1664 }
 0x853   : > { %v1666_v2 = vsub.f32 %v1659_v62, %v1665_v1 }
 0x855   : > { %v1667_v3 = vmul.f32 1.442695, %v1666_v2 }
 0x857   : > { %1954 = vpow2.f32 %v1667_v3 }
 0x85d   : > { %v1955_v4 = vpop.eup %1954 }
 0x85e   : > { %v1669_v5 = vsel %vm1662_vm6, %v1955_v4, 0.0 }
 0x85f   : > { %1670 = vadd.xlane.f32.xlu0 %v1669_v5 }
 0x8d2   : > { %v1671_v6 = vpop.xlane.xlu0 %1670 }
 0x8d3   : > { %1956 = vrcp.f32 %v1671_v6  ;;  %v1683_v11 = vand.u32 2147483648, %v1671_v6  ;;  %v1681_v13 = vand.u32 2147483647, %v1671_v6  ;;  %vm1677_vm7 = vweird.f32 %v1671_v6 }
 0x8d5   : > { %v1684_v15 = vor.u32 1.1754944e-38, %v1683_v11  ;;  %vm1682_vm9 = vcmp.eq.f32.partialorder %v1681_v13, 8.507059e+37 }
 0x8d9   : > { %v1957_v44 = vpop.eup %1956 }
 0x8da   : > { %v1673_v9 = vmul.f32 %v1957_v44, %v1671_v6  ;;  %vm1678_vm0 = vweird.f32 %v1957_v44 }
 0x8db   : > { %vm1679_vm8 = vmor %vm1677_vm7, %vm1678_vm0 }
 0x8dc   : > { %v1674_v10 = vsub.f32 1.0, %v1673_v9 }
 0x8de   : > { %v1675_v12 = vmul.f32 %v1957_v44, %v1674_v10 }
 0x8e0   : > { %v1676_v14 = vadd.f32 %v1957_v44, %v1675_v12 }
 0x8e2   : > { %v1680_v16 = vsel %vm1679_vm8, %v1957_v44, %v1676_v14 }
 0x8e3   : > { %v1685_v17 = vsel %vm1682_vm9, %v1684_v15, %v1680_v16 }
 0x8e4   : > { %v1686_v18 = vmul.f32 %v1955_v4, %v1685_v17 }
 0x8e6   : > { %v1688_v19 = vrot.slane %v1686_v18, 1  ;;  %1691 = vst.msk [vmem:[%s683_s26] sm:$0x1] %vm1690_vm10, %v1686_v18 }
 0x8e8   : > { %1692 = vst.msk [vmem:[%s683_s26 + $0x1] sm:$0x1] %vm1690_vm10, %v1688_v19 }
 0x8e9 PF: > { %s32_s3 = sadd.s32 1, %s1964_s3  }
 0x8ea   : > { %p29_p4 = scmp.ge.s32.totalorder %s32_s3, 4  }
 0x8ec   :  { %31 = sbr.rel (!%p29_p4) target bundleno = 8 (0x8), region = 138 }

</bundles_post_ra>
